<compile_context>
chip_gen: v5e
topology: v5e:2x2
jax: 0.10.0
libtpu: 0.0.40
codegen_flags: <defaults>
</compile_context>

<pallas_src>
import functools

import jax
import jax.numpy as jnp
from jax.experimental import pallas as pl
from jax.experimental.pallas import tpu as pltpu


# ---------------------------------------------------------------------------
# Kernel body: one grid step == one TransformerEncoder layer (post-norm).
# ---------------------------------------------------------------------------
def _qnet_layer_kernel(d_model, nhead,
                       x_ref, emb_w_ref, emb_b_ref,
                       wqkv_ref, bqkv_ref, wo_ref, bo_ref,
                       ln1g_ref, ln1b_ref, w1_ref, b1_ref,
                       w2t_ref, b2_ref, ln2g_ref, ln2b_ref,
                       fc_w_ref, fc_b_ref,
                       o_ref, h_ref):
    l = pl.program_id(0)
    num_layers = pl.num_programs(0)
    S = x_ref.shape[0]                 # encoder "batch" (=1 for 2-D inputs)
    L = x_ref.shape[1]                 # attention length = original batch B
    dh = d_model // nhead
    scale = 1.0 / float(dh) ** 0.5
    eps = 1e-5

    def mm(a_f32, w_bf16):
        # bf16 MXU matmul, f32 accumulation.
        return jnp.dot(a_f32.astype(jnp.bfloat16), w_bf16,
                       preferred_element_type=jnp.float32)

    def layer_norm(x, g, b):
        mu = jnp.mean(x, axis=-1, keepdims=True)
        xc = x - mu
        var = jnp.mean(xc * xc, axis=-1, keepdims=True)
        return xc * jax.lax.rsqrt(var + eps) * g + b

    # ----- embedding: only on the first layer step --------------------------
    @pl.when(l == 0)
    def _():
        for s in range(S):                       # static; S == 1 typically
            h_ref[s] = mm(x_ref[s], emb_w_ref[...]) + emb_b_ref[...]

    # ----- one encoder layer (weights for layer l, auto-pipelined) ----------
    wqkv, bqkv = wqkv_ref[0], bqkv_ref[0]
    wo, bo = wo_ref[0], bo_ref[0]
    ln1g, ln1b = ln1g_ref[0], ln1b_ref[0]
    w1, b1 = w1_ref[0], b1_ref[0]
    w2t, b2 = w2t_ref[0], b2_ref[0]              # w2 stored transposed (D, F)
    ln2g, ln2b = ln2g_ref[0], ln2b_ref[0]

    for s in range(S):                           # static unroll
        h = h_ref[s]                                             # (L, D) f32
        qkv = mm(h, wqkv) + bqkv                                 # (L, 3D) f32

        # Gather heads into a (nhead, L, dh) head-major tensor with static
        # lane slices + stack, then run attention as 2 batched einsums.
        def heads(off):
            return jnp.stack(
                [qkv[:, off + hd * dh: off + (hd + 1) * dh]
                 for hd in range(nhead)], axis=0).astype(jnp.bfloat16)

        qh, kh, vh = heads(0), heads(d_model), heads(2 * d_model)
        sc = jnp.einsum('hqd,hkd->hqk', qh, kh,
                        preferred_element_type=jnp.float32) * scale
        sc = sc - jnp.max(sc, axis=-1, keepdims=True)
        e = jnp.exp(sc)
        p = e * pl.reciprocal(jnp.sum(e, axis=-1, keepdims=True), approx=True)
        ctx = jnp.einsum('hqk,hkd->hqd', p.astype(jnp.bfloat16), vh,
                         preferred_element_type=jnp.float32)     # (H, L, dh)
        ctx = jnp.concatenate([ctx[hd] for hd in range(nhead)], axis=-1)

        attn = mm(ctx, wo) + bo                                  # (L, D)
        x1 = layer_norm(h + attn, ln1g, ln1b)

        ff = jnp.maximum(mm(x1, w1) + b1, 0.0)                   # (L, F)
        ff = jax.lax.dot_general(ff.astype(jnp.bfloat16), w2t,
                                 (((1,), (1,)), ((), ())),       # A @ B^T
                                 preferred_element_type=jnp.float32) + b2
        h_ref[s] = layer_norm(x1 + ff, ln2g, ln2b)

    # ----- mean over dim 0 (= S) + final fc: last layer step only -----------
    @pl.when(l == num_layers - 1)
    def _():
        pooled = jnp.zeros((L, d_model), jnp.float32)
        for s in range(S):
            pooled = pooled + h_ref[s]
        pooled = pooled * (1.0 / float(S))
        o_ref[...] = mm(pooled, fc_w_ref[...]) + fc_b_ref[...]


# ---------------------------------------------------------------------------
# Parameter init: synthetic, deterministic, real (unpadded) shapes.
# Matmul weights in bf16; biases / LayerNorm params in f32.
# ---------------------------------------------------------------------------
def init_params(key, input_dim, d_model, nhead, num_layers, action_dim,
                dim_feedforward=2048):
    assert d_model % nhead == 0
    keys = jax.random.split(key, 2 + num_layers)

    def lin(k, fan_in, fan_out):
        kw, kb = jax.random.split(k)
        bound = 1.0 / (fan_in ** 0.5)
        w = jax.random.uniform(kw, (fan_in, fan_out), jnp.float32, -bound, bound)
        b = jax.random.uniform(kb, (1, fan_out), jnp.float32, -bound, bound)
        return w, b

    emb_w, emb_b = lin(keys[0], input_dim, d_model)
    fc_w, fc_b = lin(keys[1], d_model, action_dim)

    names = ("wqkv", "bqkv", "wo", "bo", "ln1g", "ln1b",
             "w1", "b1", "w2t", "b2", "ln2g", "ln2b")
    per_layer = {n: [] for n in names}
    for i in range(num_layers):
        lk = jax.random.split(keys[2 + i], 6)
        wq, bq = lin(lk[0], d_model, d_model)
        wk, bk = lin(lk[1], d_model, d_model)
        wv, bv = lin(lk[2], d_model, d_model)
        wqkv = jnp.concatenate([wq, wk, wv], axis=1)         # (D, 3D)
        bqkv = jnp.concatenate([bq, bk, bv], axis=1)         # (1, 3D)
        wo, bo = lin(lk[3], d_model, d_model)
        w1, b1 = lin(lk[4], d_model, dim_feedforward)
        w2, b2 = lin(lk[5], dim_feedforward, d_model)
        w2t = jnp.transpose(w2)                              # (D, F) lane-dense
        ln_g = jnp.ones((1, d_model), jnp.float32)
        ln_b = jnp.zeros((1, d_model), jnp.float32)
        for n, v in zip(names, (wqkv, bqkv, wo, bo, ln_g, ln_b,
                                w1, b1, w2t, b2, ln_g, ln_b)):
            per_layer[n].append(v)

    p = {n: jnp.stack(v, axis=0) for n, v in per_layer.items()}
    for n in ("wqkv", "wo", "w1", "w2t"):                    # bf16 MXU weights
        p[n] = p[n].astype(jnp.bfloat16)
    p.update(emb_w=emb_w.astype(jnp.bfloat16), emb_b=emb_b,
             fc_w=fc_w.astype(jnp.bfloat16), fc_b=fc_b)
    return p


# ---------------------------------------------------------------------------
# Forward pass wrapper (mirrors the PyTorch forward exactly).
# ---------------------------------------------------------------------------
def qnetwork_transformer_forward(params, x, *, nhead):
    if x.ndim == 2:
        x = x[:, None, :]                        # unsqueeze(1) -> (B, 1, in)
    B, S, input_dim = x.shape
    d_model = params["emb_w"].shape[1]
    action_dim = params["fc_w"].shape[1]
    num_layers = params["wqkv"].shape[0]
    dff = params["w1"].shape[2]

    # permute(1, 0, 2): the batch_first encoder sees batch=S, seq=B, i.e.
    # attention runs over the original batch axis B, independently per s.
    xt = jnp.transpose(x, (1, 0, 2)).astype(jnp.float32)     # (S, B, in)

    def per_layer(shape):
        return pl.BlockSpec(shape, lambda l: (l,) + (0,) * (len(shape) - 1))

    def const(shape):
        return pl.BlockSpec(shape, lambda l: (0,) * len(shape))

    in_specs = [
        const((S, B, input_dim)),                # x        (fetched once)
        const((input_dim, d_model)),             # emb_w
        const((1, d_model)),                     # emb_b
        per_layer((1, d_model, 3 * d_model)),    # wqkv     (pipelined per layer)
        per_layer((1, 1, 3 * d_model)),          # bqkv
        per_layer((1, d_model, d_model)),        # wo
        per_layer((1, 1, d_model)),              # bo
        per_layer((1, 1, d_model)),              # ln1g
        per_layer((1, 1, d_model)),              # ln1b
        per_layer((1, d_model, dff)),            # w1
        per_layer((1, 1, dff)),                  # b1
        per_layer((1, d_model, dff)),            # w2t (transposed storage)
        per_layer((1, 1, d_model)),              # b2
        per_layer((1, 1, d_model)),              # ln2g
        per_layer((1, 1, d_model)),              # ln2b
        const((d_model, action_dim)),            # fc_w
        const((1, action_dim)),                  # fc_b
    ]

    grid_spec = pltpu.PrefetchScalarGridSpec(
        num_scalar_prefetch=0,
        grid=(num_layers,),
        in_specs=in_specs,
        out_specs=pl.BlockSpec((B, action_dim), lambda l: (0, 0)),
        scratch_shapes=[pltpu.VMEM((S, B, d_model), jnp.float32)],  # carried h
    )

    out = pl.pallas_call(
        functools.partial(_qnet_layer_kernel, d_model, nhead),
        out_shape=jax.ShapeDtypeStruct((B, action_dim), jnp.float32),
        grid_spec=grid_spec,
        compiler_params=pltpu.CompilerParams(
            dimension_semantics=("arbitrary",),          # layers are sequential
            vmem_limit_bytes=8 * 1024 * 1024),
    )(xt, params["emb_w"], params["emb_b"],
      params["wqkv"], params["bqkv"], params["wo"], params["bo"],
      params["ln1g"], params["ln1b"], params["w1"], params["b1"],
      params["w2t"], params["b2"], params["ln2g"], params["ln2b"],
      params["fc_w"], params["fc_b"])
    return out


if __name__ == "__main__":
    B, input_dim, d_model, nhead, num_layers, action_dim = 8, 16, 32, 4, 2, 4

    key = jax.random.PRNGKey(0)
    pkey, xkey = jax.random.split(key)
    params = init_params(pkey, input_dim, d_model, nhead, num_layers, action_dim)
    x = jax.random.normal(xkey, (B, input_dim), jnp.float32)

    fwd = jax.jit(functools.partial(qnetwork_transformer_forward, nhead=nhead))
    q_values = fwd(params, x)
    jax.block_until_ready(q_values)

    assert q_values.shape == (B, action_dim)
    assert bool(jnp.all(jnp.isfinite(q_values)))
    print("KERNEL_OK")
</pallas_src>

<mosaic_0001>
module attributes {stable_mosaic.version = 11 : i64} {
  func.func @_qnet_layer_kernel(%arg0: i32, %arg1: memref<1x8x16xf32, #tpu.memory_space<vmem>>, %arg2: memref<16x32xbf16, #tpu.memory_space<vmem>>, %arg3: memref<1x32xf32, #tpu.memory_space<vmem>>, %arg4: memref<1x32x96xbf16, #tpu.memory_space<vmem>>, %arg5: memref<1x1x96xf32, #tpu.memory_space<vmem>>, %arg6: memref<1x32x32xbf16, #tpu.memory_space<vmem>>, %arg7: memref<1x1x32xf32, #tpu.memory_space<vmem>>, %arg8: memref<1x1x32xf32, #tpu.memory_space<vmem>>, %arg9: memref<1x1x32xf32, #tpu.memory_space<vmem>>, %arg10: memref<1x32x2048xbf16, #tpu.memory_space<vmem>>, %arg11: memref<1x1x2048xf32, #tpu.memory_space<vmem>>, %arg12: memref<1x32x2048xbf16, #tpu.memory_space<vmem>>, %arg13: memref<1x1x32xf32, #tpu.memory_space<vmem>>, %arg14: memref<1x1x32xf32, #tpu.memory_space<vmem>>, %arg15: memref<1x1x32xf32, #tpu.memory_space<vmem>>, %arg16: memref<32x4xbf16, #tpu.memory_space<vmem>>, %arg17: memref<1x4xf32, #tpu.memory_space<vmem>>, %arg18: memref<8x4xf32, #tpu.memory_space<vmem>>, %arg19: memref<1x8x32xf32, #tpu.memory_space<vmem>>) attributes {dimension_semantics = [#tpu.dimension_semantics<arbitrary>], iteration_bounds = array<i64: 2>, scalar_prefetch = 0 : i64, scratch_operands = 1 : i64, tpu.core_type = #tpu.core_type<tc>, window_params = [{pipeline_mode = #tpu.pipeline_mode<synchronous>, transform_indices = @transform_0, window_bounds = array<i64: 1, 8, 16>}, {pipeline_mode = #tpu.pipeline_mode<synchronous>, transform_indices = @transform_1, window_bounds = array<i64: 16, 32>}, {pipeline_mode = #tpu.pipeline_mode<synchronous>, transform_indices = @transform_2, window_bounds = array<i64: 1, 32>}, {transform_indices = @transform_3, window_bounds = array<i64: 1, 32, 96>}, {transform_indices = @transform_4, window_bounds = array<i64: 1, 1, 96>}, {transform_indices = @transform_5, window_bounds = array<i64: 1, 32, 32>}, {transform_indices = @transform_6, window_bounds = array<i64: 1, 1, 32>}, {transform_indices = @transform_7, window_bounds = array<i64: 1, 1, 32>}, {transform_indices = @transform_8, window_bounds = array<i64: 1, 1, 32>}, {transform_indices = @transform_9, window_bounds = array<i64: 1, 32, 2048>}, {transform_indices = @transform_10, window_bounds = array<i64: 1, 1, 2048>}, {transform_indices = @transform_11, window_bounds = array<i64: 1, 32, 2048>}, {transform_indices = @transform_12, window_bounds = array<i64: 1, 1, 32>}, {transform_indices = @transform_13, window_bounds = array<i64: 1, 1, 32>}, {transform_indices = @transform_14, window_bounds = array<i64: 1, 1, 32>}, {pipeline_mode = #tpu.pipeline_mode<synchronous>, transform_indices = @transform_15, window_bounds = array<i64: 32, 4>}, {pipeline_mode = #tpu.pipeline_mode<synchronous>, transform_indices = @transform_16, window_bounds = array<i64: 1, 4>}, {pipeline_mode = #tpu.pipeline_mode<synchronous>, transform_indices = @transform_17, window_bounds = array<i64: 8, 4>}]} {
    %c0_i32 = arith.constant 0 : i32
    %0 = arith.cmpi eq, %arg0, %c0_i32 : i32
    %1 = arith.extui %0 : i1 to i32
    %c0_i32_0 = arith.constant 0 : i32
    %2 = arith.cmpi ne, %1, %c0_i32_0 : i32
    scf.if %2 {
      %c0_62 = arith.constant 0 : index
      %c0_63 = arith.constant 0 : index
      %c0_64 = arith.constant 0 : index
      %149 = vector.load %arg1[%c0_62, %c0_63, %c0_64] : memref<1x8x16xf32, #tpu.memory_space<vmem>>, vector<1x8x16xf32>
      %150 = vector.shape_cast %149 : vector<1x8x16xf32> to vector<8x16xf32>
      %c0_65 = arith.constant 0 : index
      %c0_66 = arith.constant 0 : index
      %151 = vector.load %arg2[%c0_65, %c0_66] : memref<16x32xbf16, #tpu.memory_space<vmem>>, vector<16x32xbf16>
      %152 = arith.truncf %150 : vector<8x16xf32> to vector<8x16xbf16>
      %cst_67 = arith.constant dense<0.000000e+00> : vector<8x32xf32>
      %153 = tpu.matmul %152, %151, %cst_67 {dimension_numbers = #tpu.dot_dimension_numbers<[1], [0], [0], [1], [0, 0, 1, 1], [], []>} : vector<8x16xbf16>, vector<16x32xbf16>, vector<8x32xf32> -> vector<8x32xf32>
      %c0_68 = arith.constant 0 : index
      %c0_69 = arith.constant 0 : index
      %154 = vector.load %arg3[%c0_68, %c0_69] : memref<1x32xf32, #tpu.memory_space<vmem>>, vector<1x32xf32>
      %155 = vector.broadcast %154 : vector<1x32xf32> to vector<8x32xf32>
      %156 = arith.addf %153, %155 : vector<8x32xf32>
      %c0_70 = arith.constant 0 : index
      %c0_71 = arith.constant 0 : index
      %c0_72 = arith.constant 0 : index
      %157 = vector.load %arg19[%c0_70, %c0_71, %c0_72] : memref<1x8x32xf32, #tpu.memory_space<vmem>>, vector<1x8x32xf32>
      %158 = vector.shape_cast %157 : vector<1x8x32xf32> to vector<8x32xf32>
      %159 = vector.shape_cast %156 : vector<8x32xf32> to vector<1x8x32xf32>
      tpu.vector_store %arg19[%c0_70, %c0_71, %c0_72], %159 {strides = array<i32>} : memref<1x8x32xf32, #tpu.memory_space<vmem>>, vector<1x8x32xf32>,
    } else {
    }
    %c0 = arith.constant 0 : index
    %c0_1 = arith.constant 0 : index
    %c0_2 = arith.constant 0 : index
    %3 = vector.load %arg4[%c0, %c0_1, %c0_2] : memref<1x32x96xbf16, #tpu.memory_space<vmem>>, vector<1x32x96xbf16>
    %4 = vector.shape_cast %3 : vector<1x32x96xbf16> to vector<32x96xbf16>
    %c0_3 = arith.constant 0 : index
    %c0_4 = arith.constant 0 : index
    %c0_5 = arith.constant 0 : index
    %5 = vector.load %arg5[%c0_3, %c0_4, %c0_5] : memref<1x1x96xf32, #tpu.memory_space<vmem>>, vector<1x1x96xf32>
    %6 = vector.shape_cast %5 : vector<1x1x96xf32> to vector<1x96xf32>
    %c0_6 = arith.constant 0 : index
    %c0_7 = arith.constant 0 : index
    %c0_8 = arith.constant 0 : index
    %7 = vector.load %arg6[%c0_6, %c0_7, %c0_8] : memref<1x32x32xbf16, #tpu.memory_space<vmem>>, vector<1x32x32xbf16>
    %8 = vector.shape_cast %7 : vector<1x32x32xbf16> to vector<32x32xbf16>
    %c0_9 = arith.constant 0 : index
    %c0_10 = arith.constant 0 : index
    %c0_11 = arith.constant 0 : index
    %9 = vector.load %arg7[%c0_9, %c0_10, %c0_11] : memref<1x1x32xf32, #tpu.memory_space<vmem>>, vector<1x1x32xf32>
    %10 = vector.shape_cast %9 : vector<1x1x32xf32> to vector<1x32xf32>
    %c0_12 = arith.constant 0 : index
    %c0_13 = arith.constant 0 : index
    %c0_14 = arith.constant 0 : index
    %11 = vector.load %arg8[%c0_12, %c0_13, %c0_14] : memref<1x1x32xf32, #tpu.memory_space<vmem>>, vector<1x1x32xf32>
    %12 = vector.shape_cast %11 : vector<1x1x32xf32> to vector<1x32xf32>
    %c0_15 = arith.constant 0 : index
    %c0_16 = arith.constant 0 : index
    %c0_17 = arith.constant 0 : index
    %13 = vector.load %arg9[%c0_15, %c0_16, %c0_17] : memref<1x1x32xf32, #tpu.memory_space<vmem>>, vector<1x1x32xf32>
    %14 = vector.shape_cast %13 : vector<1x1x32xf32> to vector<1x32xf32>
    %c0_18 = arith.constant 0 : index
    %c0_19 = arith.constant 0 : index
    %c0_20 = arith.constant 0 : index
    %15 = vector.load %arg10[%c0_18, %c0_19, %c0_20] : memref<1x32x2048xbf16, #tpu.memory_space<vmem>>, vector<1x32x2048xbf16>
    %16 = vector.shape_cast %15 : vector<1x32x2048xbf16> to vector<32x2048xbf16>
    %c0_21 = arith.constant 0 : index
    %c0_22 = arith.constant 0 : index
    %c0_23 = arith.constant 0 : index
    %17 = vector.load %arg11[%c0_21, %c0_22, %c0_23] : memref<1x1x2048xf32, #tpu.memory_space<vmem>>, vector<1x1x2048xf32>
    %18 = vector.shape_cast %17 : vector<1x1x2048xf32> to vector<1x2048xf32>
    %c0_24 = arith.constant 0 : index
    %c0_25 = arith.constant 0 : index
    %c0_26 = arith.constant 0 : index
    %19 = vector.load %arg12[%c0_24, %c0_25, %c0_26] : memref<1x32x2048xbf16, #tpu.memory_space<vmem>>, vector<1x32x2048xbf16>
    %20 = vector.shape_cast %19 : vector<1x32x2048xbf16> to vector<32x2048xbf16>
    %c0_27 = arith.constant 0 : index
    %c0_28 = arith.constant 0 : index
    %c0_29 = arith.constant 0 : index
    %21 = vector.load %arg13[%c0_27, %c0_28, %c0_29] : memref<1x1x32xf32, #tpu.memory_space<vmem>>, vector<1x1x32xf32>
    %22 = vector.shape_cast %21 : vector<1x1x32xf32> to vector<1x32xf32>
    %c0_30 = arith.constant 0 : index
    %c0_31 = arith.constant 0 : index
    %c0_32 = arith.constant 0 : index
    %23 = vector.load %arg14[%c0_30, %c0_31, %c0_32] : memref<1x1x32xf32, #tpu.memory_space<vmem>>, vector<1x1x32xf32>
    %24 = vector.shape_cast %23 : vector<1x1x32xf32> to vector<1x32xf32>
    %c0_33 = arith.constant 0 : index
    %c0_34 = arith.constant 0 : index
    %c0_35 = arith.constant 0 : index
    %25 = vector.load %arg15[%c0_33, %c0_34, %c0_35] : memref<1x1x32xf32, #tpu.memory_space<vmem>>, vector<1x1x32xf32>
    %26 = vector.shape_cast %25 : vector<1x1x32xf32> to vector<1x32xf32>
    %c0_36 = arith.constant 0 : index
    %c0_37 = arith.constant 0 : index
    %c0_38 = arith.constant 0 : index
    %27 = vector.load %arg19[%c0_36, %c0_37, %c0_38] : memref<1x8x32xf32, #tpu.memory_space<vmem>>, vector<1x8x32xf32>
    %28 = vector.shape_cast %27 : vector<1x8x32xf32> to vector<8x32xf32>
    %29 = arith.truncf %28 : vector<8x32xf32> to vector<8x32xbf16>
    %cst = arith.constant dense<0.000000e+00> : vector<8x96xf32>
    %30 = tpu.matmul %29, %4, %cst {dimension_numbers = #tpu.dot_dimension_numbers<[1], [0], [0], [1], [0, 0, 1, 1], [], []>} : vector<8x32xbf16>, vector<32x96xbf16>, vector<8x96xf32> -> vector<8x96xf32>
    %31 = vector.broadcast %6 : vector<1x96xf32> to vector<8x96xf32>
    %32 = arith.addf %30, %31 : vector<8x96xf32>
    %33 = vector.extract_strided_slice %32 {offsets = [0, 0], sizes = [8, 8], strides = [1, 1]} : vector<8x96xf32> to vector<8x8xf32>
    %34 = vector.extract_strided_slice %32 {offsets = [0, 8], sizes = [8, 8], strides = [1, 1]} : vector<8x96xf32> to vector<8x8xf32>
    %35 = vector.extract_strided_slice %32 {offsets = [0, 16], sizes = [8, 8], strides = [1, 1]} : vector<8x96xf32> to vector<8x8xf32>
    %36 = vector.extract_strided_slice %32 {offsets = [0, 24], sizes = [8, 8], strides = [1, 1]} : vector<8x96xf32> to vector<8x8xf32>
    %37 = vector.shape_cast %33 : vector<8x8xf32> to vector<1x8x8xf32>
    %38 = vector.shape_cast %34 : vector<8x8xf32> to vector<1x8x8xf32>
    %39 = vector.shape_cast %35 : vector<8x8xf32> to vector<1x8x8xf32>
    %40 = vector.shape_cast %36 : vector<8x8xf32> to vector<1x8x8xf32>
    %41 = tpu.concatenate %37, %38, %39, %40 in 0 : vector<1x8x8xf32>, vector<1x8x8xf32>, vector<1x8x8xf32>, vector<1x8x8xf32> -> vector<4x8x8xf32>
    %42 = arith.truncf %41 : vector<4x8x8xf32> to vector<4x8x8xbf16>
    %43 = vector.extract_strided_slice %32 {offsets = [0, 32], sizes = [8, 8], strides = [1, 1]} : vector<8x96xf32> to vector<8x8xf32>
    %44 = vector.extract_strided_slice %32 {offsets = [0, 40], sizes = [8, 8], strides = [1, 1]} : vector<8x96xf32> to vector<8x8xf32>
    %45 = vector.extract_strided_slice %32 {offsets = [0, 48], sizes = [8, 8], strides = [1, 1]} : vector<8x96xf32> to vector<8x8xf32>
    %46 = vector.extract_strided_slice %32 {offsets = [0, 56], sizes = [8, 8], strides = [1, 1]} : vector<8x96xf32> to vector<8x8xf32>
    %47 = vector.shape_cast %43 : vector<8x8xf32> to vector<1x8x8xf32>
    %48 = vector.shape_cast %44 : vector<8x8xf32> to vector<1x8x8xf32>
    %49 = vector.shape_cast %45 : vector<8x8xf32> to vector<1x8x8xf32>
    %50 = vector.shape_cast %46 : vector<8x8xf32> to vector<1x8x8xf32>
    %51 = tpu.concatenate %47, %48, %49, %50 in 0 : vector<1x8x8xf32>, vector<1x8x8xf32>, vector<1x8x8xf32>, vector<1x8x8xf32> -> vector<4x8x8xf32>
    %52 = arith.truncf %51 : vector<4x8x8xf32> to vector<4x8x8xbf16>
    %53 = vector.extract_strided_slice %32 {offsets = [0, 64], sizes = [8, 8], strides = [1, 1]} : vector<8x96xf32> to vector<8x8xf32>
    %54 = vector.extract_strided_slice %32 {offsets = [0, 72], sizes = [8, 8], strides = [1, 1]} : vector<8x96xf32> to vector<8x8xf32>
    %55 = vector.extract_strided_slice %32 {offsets = [0, 80], sizes = [8, 8], strides = [1, 1]} : vector<8x96xf32> to vector<8x8xf32>
    %56 = vector.extract_strided_slice %32 {offsets = [0, 88], sizes = [8, 8], strides = [1, 1]} : vector<8x96xf32> to vector<8x8xf32>
    %57 = vector.shape_cast %53 : vector<8x8xf32> to vector<1x8x8xf32>
    %58 = vector.shape_cast %54 : vector<8x8xf32> to vector<1x8x8xf32>
    %59 = vector.shape_cast %55 : vector<8x8xf32> to vector<1x8x8xf32>
    %60 = vector.shape_cast %56 : vector<8x8xf32> to vector<1x8x8xf32>
    %61 = tpu.concatenate %57, %58, %59, %60 in 0 : vector<1x8x8xf32>, vector<1x8x8xf32>, vector<1x8x8xf32>, vector<1x8x8xf32> -> vector<4x8x8xf32>
    %62 = arith.truncf %61 : vector<4x8x8xf32> to vector<4x8x8xbf16>
    "tpu.trace_start"() <{level = 10 : i32, message = "hqd,hkd->hqk"}> : () -> ()
    %cst_39 = arith.constant dense<0.000000e+00> : vector<4x8x8xf32>
    %63 = tpu.matmul %42, %52, %cst_39 {dimension_numbers = #tpu.dot_dimension_numbers<[2], [2], [1], [1], [0, 0, 0, 1, 1, 1], [0], [0]>} : vector<4x8x8xbf16>, vector<4x8x8xbf16>, vector<4x8x8xf32> -> vector<4x8x8xf32>
    "tpu.trace_stop"() : () -> ()
    %cst_40 = arith.constant 0.353553385 : f32
    %64 = vector.broadcast %cst_40 : f32 to vector<4x8x8xf32>
    %65 = arith.mulf %63, %64 : vector<4x8x8xf32>
    %cst_41 = arith.constant dense<0xFF800000> : vector<4x8xf32>
    %66 = vector.multi_reduction <maximumf>, %65, %cst_41 [2] : vector<4x8x8xf32> to vector<4x8xf32>
    %67 = vector.shape_cast %66 : vector<4x8xf32> to vector<4x8x1xf32>
    %68 = vector.broadcast %67 : vector<4x8x1xf32> to vector<4x8x8xf32>
    %69 = arith.subf %65, %68 : vector<4x8x8xf32>
    %70 = math.exp %69 : vector<4x8x8xf32>
    %cst_42 = arith.constant dense<0.000000e+00> : vector<4x8xf32>
    %71 = vector.multi_reduction <add>, %70, %cst_42 [2] : vector<4x8x8xf32> to vector<4x8xf32>
    %72 = vector.shape_cast %71 : vector<4x8xf32> to vector<4x8x1xf32>
    %73 = tpu.reciprocal %72 {approx = true} : vector<4x8x1xf32> -> vector<4x8x1xf32>
    %74 = vector.broadcast %73 : vector<4x8x1xf32> to vector<4x8x8xf32>
    %75 = arith.mulf %70, %74 : vector<4x8x8xf32>
    %76 = arith.truncf %75 : vector<4x8x8xf32> to vector<4x8x8xbf16>
    "tpu.trace_start"() <{level = 10 : i32, message = "hqk,hkd->hqd"}> : () -> ()
    %cst_43 = arith.constant dense<0.000000e+00> : vector<4x8x8xf32>
    %77 = tpu.matmul %76, %62, %cst_43 {dimension_numbers = #tpu.dot_dimension_numbers<[2], [1], [1], [2], [0, 0, 0, 1, 1, 2], [0], [0]>} : vector<4x8x8xbf16>, vector<4x8x8xbf16>, vector<4x8x8xf32> -> vector<4x8x8xf32>
    "tpu.trace_stop"() : () -> ()
    %78 = vector.extract_strided_slice %77 {offsets = [0, 0, 0], sizes = [1, 8, 8], strides = [1, 1, 1]} : vector<4x8x8xf32> to vector<1x8x8xf32>
    %79 = vector.shape_cast %78 : vector<1x8x8xf32> to vector<8x8xf32>
    %80 = vector.extract_strided_slice %77 {offsets = [1, 0, 0], sizes = [1, 8, 8], strides = [1, 1, 1]} : vector<4x8x8xf32> to vector<1x8x8xf32>
    %81 = vector.shape_cast %80 : vector<1x8x8xf32> to vector<8x8xf32>
    %82 = vector.extract_strided_slice %77 {offsets = [2, 0, 0], sizes = [1, 8, 8], strides = [1, 1, 1]} : vector<4x8x8xf32> to vector<1x8x8xf32>
    %83 = vector.shape_cast %82 : vector<1x8x8xf32> to vector<8x8xf32>
    %84 = vector.extract_strided_slice %77 {offsets = [3, 0, 0], sizes = [1, 8, 8], strides = [1, 1, 1]} : vector<4x8x8xf32> to vector<1x8x8xf32>
    %85 = vector.shape_cast %84 : vector<1x8x8xf32> to vector<8x8xf32>
    %86 = tpu.concatenate %79, %81, %83, %85 in 1 : vector<8x8xf32>, vector<8x8xf32>, vector<8x8xf32>, vector<8x8xf32> -> vector<8x32xf32>
    %87 = arith.truncf %86 : vector<8x32xf32> to vector<8x32xbf16>
    %cst_44 = arith.constant dense<0.000000e+00> : vector<8x32xf32>
    %88 = tpu.matmul %87, %8, %cst_44 {dimension_numbers = #tpu.dot_dimension_numbers<[1], [0], [0], [1], [0, 0, 1, 1], [], []>} : vector<8x32xbf16>, vector<32x32xbf16>, vector<8x32xf32> -> vector<8x32xf32>
    %89 = vector.broadcast %10 : vector<1x32xf32> to vector<8x32xf32>
    %90 = arith.addf %88, %89 : vector<8x32xf32>
    %91 = arith.addf %28, %90 : vector<8x32xf32>
    %cst_45 = arith.constant dense<0.000000e+00> : vector<8xf32>
    %92 = vector.multi_reduction <add>, %91, %cst_45 [1] : vector<8x32xf32> to vector<8xf32>
    %93 = vector.shape_cast %92 : vector<8xf32> to vector<8x1xf32>
    %cst_46 = arith.constant 3.200000e+01 : f32
    %94 = vector.broadcast %cst_46 : f32 to vector<8x1xf32>
    %95 = arith.divf %93, %94 : vector<8x1xf32>
    %96 = vector.broadcast %95 : vector<8x1xf32> to vector<8x32xf32>
    %97 = arith.subf %91, %96 : vector<8x32xf32>
    %98 = arith.mulf %97, %97 : vector<8x32xf32>
    %cst_47 = arith.constant dense<0.000000e+00> : vector<8xf32>
    %99 = vector.multi_reduction <add>, %98, %cst_47 [1] : vector<8x32xf32> to vector<8xf32>
    %100 = vector.shape_cast %99 : vector<8xf32> to vector<8x1xf32>
    %cst_48 = arith.constant 3.200000e+01 : f32
    %101 = vector.broadcast %cst_48 : f32 to vector<8x1xf32>
    %102 = arith.divf %100, %101 : vector<8x1xf32>
    %cst_49 = arith.constant 9.99999974E-6 : f32
    %103 = vector.broadcast %cst_49 : f32 to vector<8x1xf32>
    %104 = arith.addf %102, %103 : vector<8x1xf32>
    %105 = math.rsqrt %104 : vector<8x1xf32>
    %106 = vector.broadcast %105 : vector<8x1xf32> to vector<8x32xf32>
    %107 = arith.mulf %97, %106 : vector<8x32xf32>
    %108 = vector.broadcast %12 : vector<1x32xf32> to vector<8x32xf32>
    %109 = arith.mulf %107, %108 : vector<8x32xf32>
    %110 = vector.broadcast %14 : vector<1x32xf32> to vector<8x32xf32>
    %111 = arith.addf %109, %110 : vector<8x32xf32>
    %112 = arith.truncf %111 : vector<8x32xf32> to vector<8x32xbf16>
    %cst_50 = arith.constant dense<0.000000e+00> : vector<8x2048xf32>
    %113 = tpu.matmul %112, %16, %cst_50 {dimension_numbers = #tpu.dot_dimension_numbers<[1], [0], [0], [1], [0, 0, 1, 1], [], []>} : vector<8x32xbf16>, vector<32x2048xbf16>, vector<8x2048xf32> -> vector<8x2048xf32>
    %114 = vector.broadcast %18 : vector<1x2048xf32> to vector<8x2048xf32>
    %115 = arith.addf %113, %114 : vector<8x2048xf32>
    %cst_51 = arith.constant 0.000000e+00 : f32
    %116 = vector.broadcast %cst_51 : f32 to vector<8x2048xf32>
    %117 = arith.maximumf %115, %116 : vector<8x2048xf32>
    %118 = arith.truncf %117 : vector<8x2048xf32> to vector<8x2048xbf16>
    %cst_52 = arith.constant dense<0.000000e+00> : vector<8x32xf32>
    %119 = tpu.matmul %118, %20, %cst_52 {dimension_numbers = #tpu.dot_dimension_numbers<[1], [1], [0], [0], [0, 0, 1, 0], [], []>} : vector<8x2048xbf16>, vector<32x2048xbf16>, vector<8x32xf32> -> vector<8x32xf32>
    %120 = vector.broadcast %22 : vector<1x32xf32> to vector<8x32xf32>
    %121 = arith.addf %119, %120 : vector<8x32xf32>
    %122 = arith.addf %111, %121 : vector<8x32xf32>
    %cst_53 = arith.constant dense<0.000000e+00> : vector<8xf32>
    %123 = vector.multi_reduction <add>, %122, %cst_53 [1] : vector<8x32xf32> to vector<8xf32>
    %124 = vector.shape_cast %123 : vector<8xf32> to vector<8x1xf32>
    %cst_54 = arith.constant 3.200000e+01 : f32
    %125 = vector.broadcast %cst_54 : f32 to vector<8x1xf32>
    %126 = arith.divf %124, %125 : vector<8x1xf32>
    %127 = vector.broadcast %126 : vector<8x1xf32> to vector<8x32xf32>
    %128 = arith.subf %122, %127 : vector<8x32xf32>
    %129 = arith.mulf %128, %128 : vector<8x32xf32>
    %cst_55 = arith.constant dense<0.000000e+00> : vector<8xf32>
    %130 = vector.multi_reduction <add>, %129, %cst_55 [1] : vector<8x32xf32> to vector<8xf32>
    %131 = vector.shape_cast %130 : vector<8xf32> to vector<8x1xf32>
    %cst_56 = arith.constant 3.200000e+01 : f32
    %132 = vector.broadcast %cst_56 : f32 to vector<8x1xf32>
    %133 = arith.divf %131, %132 : vector<8x1xf32>
    %cst_57 = arith.constant 9.99999974E-6 : f32
    %134 = vector.broadcast %cst_57 : f32 to vector<8x1xf32>
    %135 = arith.addf %133, %134 : vector<8x1xf32>
    %136 = math.rsqrt %135 : vector<8x1xf32>
    %137 = vector.broadcast %136 : vector<8x1xf32> to vector<8x32xf32>
    %138 = arith.mulf %128, %137 : vector<8x32xf32>
    %139 = vector.broadcast %24 : vector<1x32xf32> to vector<8x32xf32>
    %140 = arith.mulf %138, %139 : vector<8x32xf32>
    %141 = vector.broadcast %26 : vector<1x32xf32> to vector<8x32xf32>
    %142 = arith.addf %140, %141 : vector<8x32xf32>
    %c0_58 = arith.constant 0 : index
    %c0_59 = arith.constant 0 : index
    %c0_60 = arith.constant 0 : index
    %143 = vector.load %arg19[%c0_58, %c0_59, %c0_60] : memref<1x8x32xf32, #tpu.memory_space<vmem>>, vector<1x8x32xf32>
    %144 = vector.shape_cast %143 : vector<1x8x32xf32> to vector<8x32xf32>
    %145 = vector.shape_cast %142 : vector<8x32xf32> to vector<1x8x32xf32>
    tpu.vector_store %arg19[%c0_58, %c0_59, %c0_60], %145 {strides = array<i32>} : memref<1x8x32xf32, #tpu.memory_space<vmem>>, vector<1x8x32xf32>,
    %c1_i32 = arith.constant 1 : i32
    %146 = arith.cmpi eq, %arg0, %c1_i32 : i32
    %147 = arith.extui %146 : i1 to i32
    %c0_i32_61 = arith.constant 0 : i32
    %148 = arith.cmpi ne, %147, %c0_i32_61 : i32
    scf.if %148 {
      %cst_62 = arith.constant 0.000000e+00 : f32
      %149 = vector.broadcast %cst_62 : f32 to vector<8x32xf32>
      %c0_63 = arith.constant 0 : index
      %c0_64 = arith.constant 0 : index
      %c0_65 = arith.constant 0 : index
      %150 = vector.load %arg19[%c0_63, %c0_64, %c0_65] : memref<1x8x32xf32, #tpu.memory_space<vmem>>, vector<1x8x32xf32>
      %151 = vector.shape_cast %150 : vector<1x8x32xf32> to vector<8x32xf32>
      %152 = arith.addf %149, %151 : vector<8x32xf32>
      %cst_66 = arith.constant 1.000000e+00 : f32
      %153 = vector.broadcast %cst_66 : f32 to vector<8x32xf32>
      %154 = arith.mulf %152, %153 : vector<8x32xf32>
      %c0_67 = arith.constant 0 : index
      %c0_68 = arith.constant 0 : index
      %155 = vector.load %arg16[%c0_67, %c0_68] : memref<32x4xbf16, #tpu.memory_space<vmem>>, vector<32x4xbf16>
      %156 = arith.truncf %154 : vector<8x32xf32> to vector<8x32xbf16>
      %cst_69 = arith.constant dense<0.000000e+00> : vector<8x4xf32>
      %157 = tpu.matmul %156, %155, %cst_69 {dimension_numbers = #tpu.dot_dimension_numbers<[1], [0], [0], [1], [0, 0, 1, 1], [], []>} : vector<8x32xbf16>, vector<32x4xbf16>, vector<8x4xf32> -> vector<8x4xf32>
      %c0_70 = arith.constant 0 : index
      %c0_71 = arith.constant 0 : index
      %158 = vector.load %arg17[%c0_70, %c0_71] : memref<1x4xf32, #tpu.memory_space<vmem>>, vector<1x4xf32>
      %159 = vector.broadcast %158 : vector<1x4xf32> to vector<8x4xf32>
      %160 = arith.addf %157, %159 : vector<8x4xf32>
      %c0_72 = arith.constant 0 : index
      %c0_73 = arith.constant 0 : index
      %161 = vector.load %arg18[%c0_72, %c0_73] : memref<8x4xf32, #tpu.memory_space<vmem>>, vector<8x4xf32>
      tpu.vector_store %arg18[%c0_72, %c0_73], %160 {strides = array<i32>} : memref<8x4xf32, #tpu.memory_space<vmem>>, vector<8x4xf32>,
    } else {
    }
    return
  }
  func.func @transform_0(%arg0: i32) -> (i32, i32, i32) {
    %c0_i32 = arith.constant 0 : i32
    %c0_i32_0 = arith.constant 0 : i32
    %c0_i32_1 = arith.constant 0 : i32
    %c0_i32_2 = arith.constant 0 : i32
    return %c0_i32, %c0_i32_0, %c0_i32_1 : i32, i32, i32
  }
  func.func @transform_1(%arg0: i32) -> (i32, i32) {
    %c0_i32 = arith.constant 0 : i32
    %c0_i32_0 = arith.constant 0 : i32
    %c0_i32_1 = arith.constant 0 : i32
    return %c0_i32, %c0_i32_0 : i32, i32
  }
  func.func @transform_2(%arg0: i32) -> (i32, i32) {
    %c0_i32 = arith.constant 0 : i32
    %c0_i32_0 = arith.constant 0 : i32
    %c0_i32_1 = arith.constant 0 : i32
    return %c0_i32, %c0_i32_0 : i32, i32
  }
  func.func @transform_3(%arg0: i32) -> (i32, i32, i32) {
    %c0_i32 = arith.constant 0 : i32
    %c0_i32_0 = arith.constant 0 : i32
    %c0_i32_1 = arith.constant 0 : i32
    return %arg0, %c0_i32, %c0_i32_0 : i32, i32, i32
  }
  func.func @transform_4(%arg0: i32) -> (i32, i32, i32) {
    %c0_i32 = arith.constant 0 : i32
    %c0_i32_0 = arith.constant 0 : i32
    %c0_i32_1 = arith.constant 0 : i32
    return %arg0, %c0_i32, %c0_i32_0 : i32, i32, i32
  }
  func.func @transform_5(%arg0: i32) -> (i32, i32, i32) {
    %c0_i32 = arith.constant 0 : i32
    %c0_i32_0 = arith.constant 0 : i32
    %c0_i32_1 = arith.constant 0 : i32
    return %arg0, %c0_i32, %c0_i32_0 : i32, i32, i32
  }
  func.func @transform_6(%arg0: i32) -> (i32, i32, i32) {
    %c0_i32 = arith.constant 0 : i32
    %c0_i32_0 = arith.constant 0 : i32
    %c0_i32_1 = arith.constant 0 : i32
    return %arg0, %c0_i32, %c0_i32_0 : i32, i32, i32
  }
  func.func @transform_7(%arg0: i32) -> (i32, i32, i32) {
    %c0_i32 = arith.constant 0 : i32
    %c0_i32_0 = arith.constant 0 : i32
    %c0_i32_1 = arith.constant 0 : i32
    return %arg0, %c0_i32, %c0_i32_0 : i32, i32, i32
  }
  func.func @transform_8(%arg0: i32) -> (i32, i32, i32) {
    %c0_i32 = arith.constant 0 : i32
    %c0_i32_0 = arith.constant 0 : i32
    %c0_i32_1 = arith.constant 0 : i32
    return %arg0, %c0_i32, %c0_i32_0 : i32, i32, i32
  }
  func.func @transform_9(%arg0: i32) -> (i32, i32, i32) {
    %c0_i32 = arith.constant 0 : i32
    %c0_i32_0 = arith.constant 0 : i32
    %c0_i32_1 = arith.constant 0 : i32
    return %arg0, %c0_i32, %c0_i32_0 : i32, i32, i32
  }
  func.func @transform_10(%arg0: i32) -> (i32, i32, i32) {
    %c0_i32 = arith.constant 0 : i32
    %c0_i32_0 = arith.constant 0 : i32
    %c0_i32_1 = arith.constant 0 : i32
    return %arg0, %c0_i32, %c0_i32_0 : i32, i32, i32
  }
  func.func @transform_11(%arg0: i32) -> (i32, i32, i32) {
    %c0_i32 = arith.constant 0 : i32
    %c0_i32_0 = arith.constant 0 : i32
    %c0_i32_1 = arith.constant 0 : i32
    return %arg0, %c0_i32, %c0_i32_0 : i32, i32, i32
  }
  func.func @transform_12(%arg0: i32) -> (i32, i32, i32) {
    %c0_i32 = arith.constant 0 : i32
    %c0_i32_0 = arith.constant 0 : i32
    %c0_i32_1 = arith.constant 0 : i32
    return %arg0, %c0_i32, %c0_i32_0 : i32, i32, i32
  }
  func.func @transform_13(%arg0: i32) -> (i32, i32, i32) {
    %c0_i32 = arith.constant 0 : i32
    %c0_i32_0 = arith.constant 0 : i32
    %c0_i32_1 = arith.constant 0 : i32
    return %arg0, %c0_i32, %c0_i32_0 : i32, i32, i32
  }
  func.func @transform_14(%arg0: i32) -> (i32, i32, i32) {
    %c0_i32 = arith.constant 0 : i32
    %c0_i32_0 = arith.constant 0 : i32
    %c0_i32_1 = arith.constant 0 : i32
    return %arg0, %c0_i32, %c0_i32_0 : i32, i32, i32
  }
  func.func @transform_15(%arg0: i32) -> (i32, i32) {
    %c0_i32 = arith.constant 0 : i32
    %c0_i32_0 = arith.constant 0 : i32
    %c0_i32_1 = arith.constant 0 : i32
    return %c0_i32, %c0_i32_0 : i32, i32
  }
  func.func @transform_16(%arg0: i32) -> (i32, i32) {
    %c0_i32 = arith.constant 0 : i32
    %c0_i32_0 = arith.constant 0 : i32
    %c0_i32_1 = arith.constant 0 : i32
    return %c0_i32, %c0_i32_0 : i32, i32
  }
  func.func @transform_17(%arg0: i32) -> (i32, i32) {
    %c0_i32 = arith.constant 0 : i32
    %c0_i32_0 = arith.constant 0 : i32
    %c0_i32_1 = arith.constant 0 : i32
    return %c0_i32, %c0_i32_0 : i32, i32
  }
}

</mosaic_0001>

<bundles_post_ra>
// kernel: qnetwork_transformer_forward.1
= control target key start
LH: loop header
LB: loop body
LE: loop exit
PB: predicated region body
PF: predicated region fallthrough
CT: control target
= control target key end

     0   :  { %s4070_s0 = inlined_call_operand.vmem [shape: f32[1,8,16], index: 0, kind: input, shape index: {}]   ;;  %s4071_s1 = inlined_call_operand.vmem [shape: bf16[16,32], index: 1, kind: input, shape index: {}]   ;;  %s4072_s2 = inlined_call_operand.hbm [shape: f32[1,32], index: 2, kind: input, shape index: {}]   ;;  %s4073_s3 = inlined_call_operand.hbm [shape: bf16[2,32,96], index: 3, kind: input, shape index: {}]   ;;  %s4074_s4 = inlined_call_operand.vmem [shape: f32[2,1,96], index: 4, kind: input, shape index: {}]   ;;  %s4075_s5 = inlined_call_operand.hbm [shape: bf16[2,32,32], index: 5, kind: input, shape index: {}]   ;;  %s4076_s6 = inlined_call_operand.hbm [shape: f32[2,1,32], index: 6, kind: input, shape index: {}]   ;;  %s4077_s7 = inlined_call_operand.vmem [shape: f32[2,1,32], index: 7, kind: input, shape index: {}]   ;;  %s4078_s8 = inlined_call_operand.vmem [shape: f32[2,1,32], index: 8, kind: input, shape index: {}]   ;;  %s4079_s9 = inlined_call_operand.hbm [shape: bf16[2,32,2048], index: 9, kind: input, shape index: {}]   ;;  %s4080_s10 = inlined_call_operand.hbm [shape: f32[2,1,2048], index: 10, kind: input, shape index: {}]   ;;  %s4081_s11 = inlined_call_operand.hbm [shape: bf16[2,32,2048], index: 11, kind: input, shape index: {}]   ;;  %s4082_s12 = inlined_call_operand.hbm [shape: f32[2,1,32], index: 12, kind: input, shape index: {}]   ;;  %s4083_s13 = inlined_call_operand.vmem [shape: f32[2,1,32], index: 13, kind: input, shape index: {}]   ;;  %s4084_s14 = inlined_call_operand.vmem [shape: f32[2,1,32], index: 14, kind: input, shape index: {}]   ;;  %s4085_s15 = inlined_call_operand.vmem [shape: bf16[32,4], index: 15, kind: input, shape index: {}]   ;;  %s4086_s16 = inlined_call_operand.hbm [shape: f32[1,4], index: 16, kind: input, shape index: {}]   ;;  %s4087_s17 = inlined_call_operand.vmem [shape: f32[8,4], index: 17, kind: output, shape index: {}]  }
   0x1   :  { %4099 = sst [smem:[#allocation30_spill]] %s4070_s0 }
   0x2   :  { %4100 = sst [smem:[#allocation31_spill]] %s4071_s1 }
   0x3   :  { %4101 = sst [smem:[#allocation32_spill]] %s4072_s2 }
   0x4   :  { %4102 = sst [smem:[#allocation33_spill]] %s4073_s3 }
   0x5   :  { %4103 = sst [smem:[#allocation34_spill]] %s4074_s4 }
   0x6   :  { %4104 = sst [smem:[#allocation35_spill]] %s4075_s5 }
   0x7   :  { %4105 = sst [smem:[#allocation36_spill]] %s4077_s7 }
   0x8   :  { %4106 = sst [smem:[#allocation37_spill]] %s4078_s8 }
   0x9   :  { %4107 = sst [smem:[#allocation38_spill]] %s4083_s13 }
   0xa   :  { %4108 = sst [smem:[#allocation39_spill]] %s4084_s14 }
   0xb   :  { %4109 = sst [smem:[#allocation40_spill]] %s4085_s15 }
   0xc   :  { %4110 = sst [smem:[#allocation41_spill]] %s4086_s16 }
   0xd   :  { %4111 = sst [smem:[#allocation42_spill]] %s4087_s17 }
   0xe   :  { %22 = vsyncpa [#allocation4], 0 }
   0xf   :  { %23 = vsyncpa [#allocation6], 0 }
  0x10   :  { %25 = vsyncpa [#allocation6 + $0x1], 0 }
  0x11   :  { %26 = vsyncpa [#allocation9], 0 }
  0x12   :  { %28 = vsyncpa [#allocation9 + $0x1], 0 }
  0x13   :  { %29 = vsyncpa [#allocation12], 0 }
  0x14   :  { %31 = vsyncpa [#allocation12 + $0x1], 0 }
  0x15   :  { %32 = vsyncpa [#allocation15], 0 }
  0x16   :  { %34 = vsyncpa [#allocation15 + $0x1], 0  ;;  %s3462_s24 = smov 0   ;;  %s3464_s25 = smov 0  }
  0x17   :  { %s3466_s26 = smov 0   ;;  %s3468_s27 = smov 0  }
  0x18 LB: > { %4112 = sst [smem:[#allocation23_spill]] %s3348_s25  ;;  %s3481_s28 = sadd.s32 4294967295, %s3356_s27   ;;  %s3356_s27 = sphi %s3468_s27, %s4158_s27   ;;  %s3352_s26 = sphi %s3466_s26, %s4161_s26   ;;  %s3348_s25 = sphi %s3464_s25, %s4160_s25   ;;  %s3344_s24 = sphi %s3462_s24, %s4159_s24  }
  0x19   : > { %4113 = sst [smem:[#allocation24_spill]] %s3352_s26  ;;  %s3484_s29 = sadd.s32 1, %s3356_s27  }
  0x1a   : > { %4114 = sst [smem:[#allocation25_spill]] %s3481_s28  ;;  %s107_s0 = ssub.s32 %s3356_s27, %s3484_s29 }
  0x1b   : > { %4115 = sst [smem:[#allocation26_spill]] %s3484_s29  ;;  %s110_s30 = sadd.s32 1, %s3352_s26 }
  0x1c   : > { %p108_p0 = scmp.eq.s32.totalorder %s107_s0, 0  ;;  %p117_p1 = scmp.ne.s32.totalorder %s3352_s26, %s3348_s25 }
  0x1d   : > { %p118_p2 = scmp.eq.s32.totalorder %s3356_s27, 0  ;;  %p123_p3 = scmp.ne.s32.totalorder %s3348_s25, %s3344_s24 }
  0x1e   : > { %s3494_s18 = scalar_select %p108_p0, %s3352_s26, %s110_s30  }
  0x1f   : > { %p3496_p4 = por %p118_p2, %p117_p1  ;;  %p124_p5 = scmp.eq.s32.totalorder %s3481_s28, 0 }
  0x20   : > { %4116 = sst [smem:[#allocation27_spill]] %s3494_s18  ;;  %p2482_p6 = scmp.ge.s32.totalorder %s3356_s27, 1 }
  0x21   : > { %p483_p7 = scmp.lt.s32.totalorder %s3356_s27, 3  ;;  %p3505_p8 = por %p124_p5, %p123_p3 }
  0x22   : > { %p2483_p9 = scmp.ne.s32.totalorder %s3481_s28, 0  ;;  %s4122_s16 = sld [smem:[#allocation41_spill]] }
  0x23   : > { %s4118_s1 = scalar_select %p3505_p8, 1, 0 }
  0x24   : > { %p3510_p10 = pnand %p2482_p6, %p483_p7  ;;  %s3358_s24 = smov [#allocation16]  }
  0x25   : > { %4119 = sst [smem:[#allocation28_spill]] %s4118_s1  ;;  %s518_s0 = sshll.u32 %s3358_s24, 4  ;;  %s519_s0 = int_to_ptr.vmem [resolvable:$true] %s518_s0 }
  0x26   : > { %s4120_s20 = scalar_select %p3510_p10, 1, 0 }
  0x27   : > { %p2921_p11 = pneg %p3510_p10  ;;  %p2952_p13 = scmp.lt.s32.totalorder %s3356_s27, 2 }
  0x28   : > { %4121 = sst [smem:[#allocation29_spill]] %s4120_s20  ;;  %s516_s23 = sshll.u32 %s4122_s16, 4  ;;  %s517_s23 = int_to_ptr.hbm [resolvable:$true] %s516_s23 }
  0x29   : > { %p3521_p12 = pnand %p2921_p11, %p124_p5  ;;  %s3527_s18 = sand.u32 1, %s3356_s27  }
  0x2a   : > { %s3530_s29 = sand.u32 1, %s3352_s26   ;;  %p3534_p0 = pnand %p2952_p13, %p3496_p4 }
  0x2b   : > { %2927 = dma.hbm_to_vmem [thread:$0]  (!%p3521_p12), %s517_s23, 16, %s519_s0, [#allocation15]  }
  0x2c   : > { %s3541_s22 = sshll.u32 %s3530_s29, 4  ;;  %s3544_s24 = sshll.u32 %s3356_s27, 4 }
  0x2d   : > { %s4125_s3 = sld [smem:[#allocation33_spill]]  ;;  %s533_s19 = scalar_lea.vmem [#allocation5], %s3541_s22 }
  0x2e   : > { %s541_s14 = sshll.u32 %s533_s19, 4  ;;  %p3554_p2 = pneg %p3534_p0  ;;  %s542_s14 = int_to_ptr.vmem [resolvable:$true] %s541_s14 }
  0x33   : > { %s538_s26 = scalar_lea.hbm %s4125_s3, %s3544_s24 }
  0x34   : > { %s539_s15 = sshll.u32 %s538_s26, 4  ;;  %s3069_s26 = scalar_lea.hbm %s4125_s3, 32  ;;  %s540_s15 = int_to_ptr.hbm [resolvable:$true] %s539_s15 }
  0x35   : > { %s3062_s8 = sshra.s32 %s540_s15, 4  ;;  %s3063_s8 = int_to_ptr.hbm [resolvable:$true] %s3062_s8 }
  0x36   : > { %s3064_s7 = scalar_lea.hbm %s3063_s8, 16  ;;  %p3070_p6 = scmp.lt.s32.totalorder %s3063_s8, %s4125_s3 }
  0x37   : > { %p3065_p1 = scmp.ne.s32.totalorder %s3063_s8, %s3064_s7  ;;  %p3071_p7 = scmp.lt.s32.totalorder %s3069_s26, %s3064_s7 }
  0x39   : > { %p3067_p3 = pnand %p3554_p2, %p3065_p1  ;;  %p3072_p11 = por %p3071_p7, %p3070_p6 }
  0x3b   : > { %p3068_p4 = pneg %p3067_p3 }
  0x3d   : > { %p3073_p13 = pnand %p3072_p11, %p3068_p4 }
  0x3f   : > { %3076 = shalt.err (!%p3073_p13)
}
  0x40   : > { %s3359_s13 = smov 64   ;;  %s3360_s4 = smov 4  }
  0x41   : > { %s4127_s16 = scalar_lea.sflag [#allocation6], %s3527_s18  ;;  %s585_s7 = scalar_lea.hbm %s4076_s6, %s3356_s27 }
  0x42   : > { %2931 = dma.hbm_to_vmem [thread:$0]  (!%p3534_p0), %s540_s15, 256, %s542_s14, %s4127_s16, %s3359_s13, %s3359_s13, %s3360_s4  }
  0x43   : > { %s582_s26 = scalar_lea.vmem [#allocation8], %s3530_s29  ;;  %s587_s19 = sshll.u32 %s585_s7, 4  ;;  %s588_s19 = int_to_ptr.hbm [resolvable:$true] %s587_s19 }
  0x44   : > { %s589_s0 = sshll.u32 %s582_s26, 4  ;;  %s4098_s3 = scalar_lea.sflag [#allocation9], %s3527_s18  ;;  %s590_s0 = int_to_ptr.vmem [resolvable:$true] %s589_s0 }
  0x45   : > { %s3092_s1 = sshra.s32 %s588_s19, 4  ;;  %s3099_s14 = scalar_lea.hbm %s4076_s6, 2  ;;  %s3093_s1 = int_to_ptr.hbm [resolvable:$true] %s3092_s1 }
  0x46   : > { %s3094_s25 = scalar_lea.hbm %s3093_s1, 1  ;;  %p3100_p6 = scmp.lt.s32.totalorder %s3093_s1, %s4076_s6 }
  0x47   : > { %p3095_p1 = scmp.ne.s32.totalorder %s3093_s1, %s3094_s25  ;;  %p3101_p7 = scmp.lt.s32.totalorder %s3099_s14, %s3094_s25 }
  0x49   : > { %p3097_p3 = pnand %p3095_p1, %p3554_p2  ;;  %p3102_p11 = por %p3101_p7, %p3100_p6 }
  0x4b   : > { %p3098_p4 = pneg %p3097_p3 }
  0x4d   : > { %p3103_p13 = pnand %p3102_p11, %p3098_p4 }
  0x4f   : > { %3106 = shalt.err (!%p3103_p13)
}
  0x50   : > { %2937 = dma.hbm_to_vmem [thread:$0]  (!%p3534_p0), %s588_s19, 16, %s590_s0, %s4098_s3  }
  0x51   : > { %s638_s20 = scalar_lea.hbm %s4080_s10, %s3544_s24  ;;  %s634_s7 = scalar_lea.vmem [#allocation11], %s3541_s22 }
  0x52   : > { %s640_s8 = sshll.u32 %s638_s20, 4  ;;  %s642_s1 = sshll.u32 %s634_s7, 4  ;;  %s641_s8 = int_to_ptr.hbm [resolvable:$true] %s640_s8  ;;  %s643_s1 = int_to_ptr.vmem [resolvable:$true] %s642_s1 }
  0x53   : > { %s631_s25 = scalar_lea.sflag [#allocation12], %s3527_s18  ;;  %s3122_s26 = sshra.s32 %s641_s8, 4  ;;  %s3123_s26 = int_to_ptr.hbm [resolvable:$true] %s3122_s26 }
  0x54   : > { %s3124_s14 = scalar_lea.hbm %s3123_s26, 16  ;;  %s3129_s0 = scalar_lea.hbm %s4080_s10, 32 }
  0x55   : > { %p3125_p1 = scmp.ne.s32.totalorder %s3123_s26, %s3124_s14  ;;  %p3130_p6 = scmp.lt.s32.totalorder %s3123_s26, %s4080_s10 }
  0x56   : > { %p3131_p7 = scmp.lt.s32.totalorder %s3129_s0, %s3124_s14 }
  0x57   : > { %p3127_p3 = pnand %p3125_p1, %p3554_p2 }
  0x58   : > { %p3132_p11 = por %p3131_p7, %p3130_p6 }
  0x59   : > { %p3128_p4 = pneg %p3127_p3 }
  0x5b   : > { %p3133_p13 = pnand %p3132_p11, %p3128_p4 }
  0x5d   : > { %3136 = shalt.err (!%p3133_p13)
}
  0x5e   : > { %2943 = dma.hbm_to_vmem [thread:$0]  (!%p3534_p0), %s641_s8, 256, %s643_s1, %s631_s25  }
  0x5f   : > { %s4128_s2 = sld [smem:[#allocation32_spill]]  ;;  %s3361_s26 = smov [#allocation3]  }
  0x60   : > { %s503_s14 = sshll.u32 %s3361_s26, 4  ;;  %s4129_s5 = sld [smem:[#allocation35_spill]]  ;;  %s504_s14 = int_to_ptr.vmem [resolvable:$true] %s503_s14 }
  0x61   : > { %s561_s19 = scalar_lea.vmem [#allocation7], %s3541_s22  ;;  %s2492_s8 = sshll.u32 %s3530_s29, 8 }
  0x62   : > { %s569_s17 = sshll.u32 %s561_s19, 4  ;;  %s570_s17 = int_to_ptr.vmem [resolvable:$true] %s569_s17 }
  0x65   : > { %s501_s7 = sshll.u32 %s4128_s2, 4  ;;  %s502_s7 = int_to_ptr.hbm [resolvable:$true] %s501_s7 }
  0x66   : > { %2924 = dma.hbm_to_vmem [thread:$0]  (!%p3521_p12), %s502_s7, 16, %s504_s14, [#allocation4]  }
  0x67   : > { %s566_s0 = scalar_lea.hbm %s4129_s5, %s3544_s24  ;;  %s3189_s7 = scalar_lea.hbm %s4129_s5, 32 }
  0x68   : > { %s567_s3 = sshll.u32 %s566_s0, 4  ;;  %s568_s3 = int_to_ptr.hbm [resolvable:$true] %s567_s3 }
  0x69   : > { %s3182_s1 = sshra.s32 %s568_s3, 4  ;;  %s3183_s1 = int_to_ptr.hbm [resolvable:$true] %s3182_s1 }
  0x6a   : > { %s3184_s28 = scalar_lea.hbm %s3183_s1, 16  ;;  %p3190_p12 = scmp.lt.s32.totalorder %s3183_s1, %s4129_s5 }
  0x6b   : > { %p3185_p1 = scmp.ne.s32.totalorder %s3183_s1, %s3184_s28  ;;  %p3191_p6 = scmp.lt.s32.totalorder %s3189_s7, %s3184_s28 }
  0x6d   : > { %p3187_p3 = pnand %p3185_p1, %p3554_p2  ;;  %p3192_p7 = por %p3191_p6, %p3190_p12 }
  0x6f   : > { %p3188_p4 = pneg %p3187_p3 }
  0x71   : > { %p3193_p11 = pnand %p3192_p7, %p3188_p4 }
  0x73   : > { %3196 = shalt.err (!%p3193_p11)
}
  0x74   : > { %s4130_s22 = scalar_lea.sflag [#allocation6], %s3527_s18  ;;  %s2826_s24 = sshll.u32 %s3356_s27, 8 }
  0x75   : > { %2934 = dma.hbm_to_vmem [thread:$0]  (!%p3534_p0), %s568_s3, 256, %s570_s17, %s4130_s22, %s3359_s13, %s3359_s13, %s3360_s4  }
  0x76   : > { %s617_s0 = scalar_lea.hbm %s4079_s9, %s2826_s24  ;;  %s612_s19 = scalar_lea.vmem [#allocation10], %s2492_s8 }
  0x77   : > { %s620_s1 = sshll.u32 %s612_s19, 4  ;;  %s618_s28 = sshll.u32 %s617_s0, 4  ;;  %s621_s1 = int_to_ptr.vmem [resolvable:$true] %s620_s1  ;;  %s619_s28 = int_to_ptr.hbm [resolvable:$true] %s618_s28 }
  0x78   : > { %s3212_s20 = sshra.s32 %s619_s28, 4  ;;  %s3219_s4 = scalar_lea.hbm %s4079_s9, 512  ;;  %s3213_s20 = int_to_ptr.hbm [resolvable:$true] %s3212_s20 }
  0x79   : > { %s3214_s30 = scalar_lea.hbm %s3213_s20, 256  ;;  %p3220_p4 = scmp.lt.s32.totalorder %s3213_s20, %s4079_s9 }
  0x7a   : > { %p3215_p13 = scmp.ne.s32.totalorder %s3213_s20, %s3214_s30  ;;  %p3221_p12 = scmp.lt.s32.totalorder %s3219_s4, %s3214_s30 }
  0x7c   : > { %p3217_p1 = pnand %p3215_p13, %p3554_p2  ;;  %p3222_p6 = por %p3221_p12, %p3220_p4 }
  0x7e   : > { %p3218_p3 = pneg %p3217_p1 }
  0x80   : > { %p3223_p7 = pnand %p3222_p6, %p3218_p3 }
  0x82   : > { %3226 = shalt.err (!%p3223_p7)
}
  0x83   : > { %s3362_s14 = smov 1024   ;;  %s4131_s22 = scalar_lea.sflag [#allocation9], %s3527_s18 }
  0x84   : > { %2940 = dma.hbm_to_vmem [thread:$0]  (!%p3534_p0), %s619_s28, 4096, %s621_s1, %s4131_s22, %s3362_s14, %s3362_s14, %s3359_s13  }
  0x85   : > { %s658_s0 = scalar_lea.hbm %s4081_s11, %s2826_s24  ;;  %s653_s20 = scalar_lea.vmem [#allocation13], %s2492_s8 }
  0x86   : > { %s659_s19 = sshll.u32 %s658_s0, 4  ;;  %s661_s30 = sshll.u32 %s653_s20, 4  ;;  %s660_s19 = int_to_ptr.hbm [resolvable:$true] %s659_s19  ;;  %s662_s30 = int_to_ptr.vmem [resolvable:$true] %s661_s30 }
  0x87   : > { %s3242_s7 = sshra.s32 %s660_s19, 4  ;;  %s3249_s1 = scalar_lea.hbm %s4081_s11, 512  ;;  %s3243_s7 = int_to_ptr.hbm [resolvable:$true] %s3242_s7 }
  0x88   : > { %s3244_s3 = scalar_lea.hbm %s3243_s7, 256  ;;  %p3250_p3 = scmp.lt.s32.totalorder %s3243_s7, %s4081_s11 }
  0x89   : > { %p3245_p11 = scmp.ne.s32.totalorder %s3243_s7, %s3244_s3  ;;  %p3251_p4 = scmp.lt.s32.totalorder %s3249_s1, %s3244_s3 }
  0x8b   : > { %p3247_p13 = pnand %p3245_p11, %p3554_p2  ;;  %p3252_p12 = por %p3251_p4, %p3250_p3 }
  0x8d   : > { %p3248_p1 = pneg %p3247_p13 }
  0x8f   : > { %p3253_p6 = pnand %p3252_p12, %p3248_p1 }
  0x91   : > { %3256 = shalt.err (!%p3253_p6)
}
  0x92   : > { %2946 = dma.hbm_to_vmem [thread:$0]  (!%p3534_p0), %s660_s19, 4096, %s662_s30, %s631_s25, %s3362_s14, %s3362_s14, %s3359_s13  }
  0x93   : > { %s677_s22 = scalar_lea.hbm %s4082_s12, %s3356_s27  ;;  %s674_s15 = scalar_lea.vmem [#allocation14], %s3530_s29 }
  0x94   : > { %s681_s16 = sshll.u32 %s674_s15, 4  ;;  %s679_s0 = sshll.u32 %s677_s22, 4  ;;  %s682_s16 = int_to_ptr.vmem [resolvable:$true] %s681_s16  ;;  %s680_s0 = int_to_ptr.hbm [resolvable:$true] %s679_s0 }
  0x95   : > { %s672_s20 = scalar_lea.sflag [#allocation15], %s3527_s18  ;;  %s3272_s7 = sshra.s32 %s680_s0, 4  ;;  %s3273_s7 = int_to_ptr.hbm [resolvable:$true] %s3272_s7 }
  0x96   : > { %s3274_s3 = scalar_lea.hbm %s3273_s7, 1  ;;  %s3279_s13 = scalar_lea.hbm %s4082_s12, 2 }
  0x97   : > { %p3275_p7 = scmp.ne.s32.totalorder %s3273_s7, %s3274_s3  ;;  %p3280_p1 = scmp.lt.s32.totalorder %s3273_s7, %s4082_s12 }
  0x98   : > { %p3281_p3 = scmp.lt.s32.totalorder %s3279_s13, %s3274_s3 }
  0x99   : > { %p3277_p11 = pnand %p3275_p7, %p3554_p2 }
  0x9a   : > { %p3282_p4 = por %p3281_p3, %p3280_p1 }
  0x9b   : > { %p3278_p13 = pneg %p3277_p11 }
  0x9d   : > { %p3283_p12 = pnand %p3282_p4, %p3278_p13 }
  0x9f   : > { %3286 = shalt.err (!%p3283_p12)
}
  0xa0   : > { %2949 = dma.hbm_to_vmem [thread:$0]  (!%p3534_p0), %s680_s0, 16, %s682_s16, %s672_s20  }
  0xa1   : > { %702 = sbr.rel (%p3510_p10) target bundleno = 2498 (0x9c2), region = 88  ;;  %s4133_s29 = sld [smem:[#allocation25_spill]] (!%p3510_p10) }
  0xa6   : > { %3319 = dma.done.wait (%p124_p5), [#allocation4], 16  }
  0xa7   : > { %3321 = vsyncadd (%p124_p5), [#allocation4], 4294967280  ;;  %s4134_s18 = sld [smem:[#allocation23_spill]]  ;;  %s709_s19 = sand.u32 1, %s4133_s29  }
  0xa8   : > { %s710_s21 = scalar_lea.sflag [#allocation6], %s709_s19 }
  0xad   : > { %s3696_s30 = sand.u32 1, %s4134_s18  }
  0xae   : > { %s3699_s1 = sshll.u32 %s3696_s30, 4 }
  0xaf   : > { %3323 = dma.done.wait (%p3505_p8), %s710_s21, 512  }
  0xb0   : > { %3325 = vsyncadd (%p3505_p8), %s710_s21, 4294966784  ;;  %s730_s8 = scalar_lea.sflag [#allocation9], %s709_s19 }
  0xb1   : > { %3327 = dma.done.wait (%p3505_p8), %s730_s8, 4112  }
  0xb2   : > { %3329 = vsyncadd (%p3505_p8), %s730_s8, 4294963184  ;;  %s2504_s22 = sshll.u32 %s3696_s30, 8  ;;  %s749_s16 = scalar_lea.sflag [#allocation12], %s709_s19 }
  0xb3   : > { %s3713_s15 = scalar_lea.vmem [#allocation10], %s2504_s22 }
  0xb4   : > { %3331 = dma.done.wait (%p3505_p8), %s749_s16, 4352  }
  0xb5   : > { %3333 = vsyncadd (%p3505_p8), %s749_s16, 4294962944  ;;  %s3720_s20 = scalar_lea.vmem [#allocation13], %s2504_s22  ;;  %s769_s7 = scalar_lea.sflag [#allocation15], %s709_s19 }
  0xb6   : > { %3335 = dma.done.wait (%p3505_p8), %s769_s7, 16  }
  0xb7   : > { %3337 = vsyncadd (%p3505_p8), %s769_s7, 4294967280 }
  0xb8   : > { %3339 = dma.done.wait (%p124_p5), [#allocation15], 16  }
  0xb9   : > { %3341 = vsyncadd (%p124_p5), [#allocation15], 4294967280  ;;  %p866_p10 = scmp.lt.s32.totalorder %s4133_s29, 1  ;;  %s4136_s25 = sld [smem:[#allocation34_spill]] }
  0xba   : > { %s4137_s23 = sld [smem:[#allocation36_spill]] }
  0xbb   : > { %s3733_s4 = scalar_select %p866_p10, %s4133_s29, 1 }
  0xbc   : > { %s4138_s22 = sld [smem:[#allocation37_spill]] }
  0xbd   : > { %s4139_s0 = sld [smem:[#allocation38_spill]] }
  0xbe   : > { %s4140_s17 = sld [smem:[#allocation39_spill]] }
  0xbf   : > { %s868_s14 = scalar_lea.vmem %s4136_s25, %s3733_s4  ;;  %s4141_s5 = sld [smem:[#allocation31_spill]] (!%p2483_p9) }
  0xc0   : > { %s871_s19 = scalar_lea.vmem %s4137_s23, %s3733_s4  ;;  %885 = sbr.rel (%p2483_p9) target bundleno = 336 (0x150), region = 128 }
  0xc1   : > { %s4142_s23 = sld [smem:[#allocation30_spill]] (!%p2483_p9) }
  0xc2   : > { %s874_s16 = scalar_lea.vmem %s4138_s22, %s3733_s4 }
  0xc3   : > { %s877_s24 = scalar_lea.vmem %s4139_s0, %s3733_s4 }
  0xc4   : > { %s880_s13 = scalar_lea.vmem %s4140_s17, %s3733_s4 }
  0xc5   : > { %v2828_v0 = vld [vmem:[%s4141_s5] sm:$0xff]  ;;  %vm900_vm0 = vcmask 130048   ;;  %v3001_v3 = vld [vmem:[#allocation3] ss:$0 sm:$0xff]  ;;  %vm917_vm1 = vcmask 261120  }
  0xc6   : > { %911 = vmatpush.bf16.msra.mxu0 %v2828_v0 }
  0xc7   : > { %v886_v1 = vld [vmem:[%s4142_s23] sm:$0xff] }
  0xc8   : > { %v889_v2 = vpack.c.bf16 %v886_v1, %v886_v1 }
  0xca   : > { %2513 = vmatmul.msk.bf16.vlgmr.msra.gmra.mxu0 %vm900_vm0, %v889_v2 }
 0x147   : > { %v913_v4 = vpop.f32.mrf.mxu0 }
 0x148   : > { %v914_v5 = vadd.f32 %v3001_v3, %v913_v4 }
 0x14a   : > { %918 = vst.msk [vmem:[#allocation2] sm:$0xff] %vm917_vm1, %v914_v5 }
 0x14f   : > { %v915_v6 = vpop.f32.mrf.mxu0 }
 0x150 PF: > { %s4143_s29 = scalar_lea.vmem [#allocation5], %s3699_s1  ;;  %vm1017_vm2 = vcmask 261120   ;;  %v3002_v11 = vld [vmem:[%s868_s14] ss:$0 sm:$0xff]  ;;  %s3363_s5 = smov 104   ;;  %vm1053_vm3 = vcmask 64512  }
 0x151   : > { %v2830_v7 = vld [vmem:[%s4143_s29 + $0x8] sm:$0xff]  ;;  %s4144_s2 = smov %s4143_s29  ;;  %s3364_s28 = smov 120   ;;  %vm1202_vm4 = vcmask 1043456   ;;  %vm1295_vm5 = vcmask 130048   ;;  %vm1297_vm6 = vcmask 195584  }
 0x152   : > { %v2829_v8 = vld [vmem:[%s4144_s2] sm:$0xff]  ;;  %1027 = vmatpush.bf16.msra.mxu0 %v2830_v7  ;;  %s3365_s26 = smov 112   ;;  %s3366_s0 = smov 96  }
 0x153   : > { %v3767_v9 = vld [vmem:[#allocation2] sm:$0xff]  ;;  %s3367_s3 = smov 64   ;;  %s3368_s14 = smov 16  }
 0x154   : > { %v1001_v10 = vpack.c.bf16 %v3767_v9, %v3767_v9  ;;  %s3369_s21 = smov 8   ;;  %s3370_s8 = smov 24  }
 0x155   : > { %s4145_s22 = scalar_lea.vmem [#allocation7], %s3699_s1  ;;  %s4147_s17 = scalar_lea.vmem [#allocation8], %s3696_s30 }
 0x156   : > { %1028 = vmatpush.bf16.msra.mxu0 %v2829_v8  ;;  %s4146_s7 = smov %s4145_s22 }
 0x159   : > { %2522 = vmatmul.msk.bf16.vlgmr.msra.gmra.mxu0 %vm1017_vm2, %v1001_v10 }
 0x1d6   : > { %v1030_v12 = vpop.f32.mrf.mxu0 }
 0x1d7   : > { %v1031_v13 = vadd.f32 %v3002_v11, %v1030_v12 }
 0x1d9   : > { %1041 = vrot.lane.b32.xlu1 %v1031_v13, %s3363_s5  ;;  %1035 = vrot.lane.b32.xlu0 %v1031_v13, %s3364_s28  ;;  %v1044_v15 = vpack.c.bf16 %v1031_v13, %v1031_v13 }
 0x1db   : > { %v1049_v16 = vunpack.c.l.b16 %v1044_v15 }
 0x1dd   : > { %v3772_v17 = vpack.c.b16 %v1049_v16, %v1049_v16 }
 0x1de   : > { %v1032_v14 = vpop.f32.mrf.mxu0 }
 0x1e1   : > { %1038 = vrot.lane.b32.xlu0 %v1031_v13, %s3365_s26 }
 0x1e9   : > { %1051 = vrot.lane.b32.xlu0 %v3772_v17, %s3366_s0 }
 0x24b   : > { %v1036_v18 = vpop.permute.xlu0 %1035  ;;  %v1042_v24 = vpop.permute.xlu1 %1041 }
 0x24c   : > { %v1045_v19 = vpack.c.bf16 %v1036_v18, %v1036_v18  ;;  %v1047_v26 = vpack.c.bf16 %v1042_v24, %v1042_v24 }
 0x24e   : > { %v1074_v20 = vunpack.c.l.b16 %v1045_v19  ;;  %v1122_v29 = vunpack.c.l.b16 %v1047_v26 }
 0x250   : > { %v3775_v21 = vpack.c.b16 %v1074_v20, %v1074_v20  ;;  %v1123_v31 = vpack.c.b16 %v1122_v29, %v1122_v29 }
 0x252   : > { %1076 = vrot.lane.b32.xlu1 %v3775_v21, %s3366_s0 }
 0x253   : > { %v1039_v22 = vpop.permute.xlu0 %1038 }
 0x254   : > { %v1046_v23 = vpack.c.bf16 %v1039_v22, %v1039_v22 }
 0x256   : > { %v1098_v25 = vunpack.c.l.b16 %v1046_v23 }
 0x258   : > { %v3778_v27 = vpack.c.b16 %v1098_v25, %v1098_v25 }
 0x25a   : > { %1100 = vrot.lane.b32.xlu2 %v3778_v27, %s3366_s0 }
 0x25b   : > { %v1052_v28 = vpop.permute.xlu0 %1051 }
 0x25c   : > { %v1058_v30 = vsel %vm1053_vm3, %v1052_v28, 0 }
 0x25d   : > { %1067 = vmatpush.bf16.xpose.msra.mxu1 %v1058_v30 }
 0x262   : > { %1124 = vrot.lane.b32.xlu2 %v1123_v31, %s3366_s0  ;;  %s4155_s0 = sld [smem:[#allocation25_spill]] }
 0x264   : > { %2523 = vmatmul.msk.bf16.vlgmr.msra.gmra.mxu1 %vm1053_vm3, %v1044_v15 }
 0x268   : > { %p2812_p5 = scmp.ne.s32.totalorder %s4155_s0, 1 }
 0x2b4   : > { %v1101_v32 = vpop.permute.xlu2 %1100 }
 0x2b5   : > { %v1106_v33 = vsel %vm1053_vm3, %v1101_v32, 0 }
 0x2b6   : > { %1115 = vmatpush.bf16.xpose.msra.mxu3 %v1106_v33 }
 0x2bc   : > { %v1125_v34 = vpop.permute.xlu2 %1124 }
 0x2bd   : > { %2525 = vmatmul.msk.bf16.vlgmr.msra.gmra.mxu3 %vm1053_vm3, %v1046_v23  ;;  %v1130_v35 = vsel %vm1053_vm3, %v1125_v34, 0 }
 0x2be   : > { %1139 = vmatpush.bf16.xpose.msrb.mxu0 %v1130_v35 }
 0x2c4   : > { %v1077_v36 = vpop.permute.xlu1 %1076 }
 0x2c5   : > { %2526 = vmatmul.msk.bf16.vlgmr.msrb.gmra.mxu0 %vm1053_vm3, %v1047_v26  ;;  %v1082_v37 = vsel %vm1053_vm3, %v1077_v36, 0 }
 0x2c6   : > { %1091 = vmatpush.bf16.xpose.msra.mxu2 %v1082_v37 }
 0x2cd   : > { %2524 = vmatmul.msk.bf16.vlgmr.msra.gmra.mxu2 %vm1053_vm3, %v1045_v19 }
 0x2e1   : > { %v1069_v38 = vpop.f32.mrf.mxu1 }
 0x2e2   : > { %v1145_v46 = vmul.f32 0.35355338, %v1069_v38 }
 0x2e4   : > { %v1149_v49 = vsel %vm1053_vm3, %v1145_v46, -inf }
 0x2e9   : > { %v1071_v39 = vpop.f32.mrf.mxu1 }
 0x340   : > { %v1117_v40 = vpop.f32.mrf.mxu3 }
 0x341   : > { %v1147_v41 = vmul.f32 0.35355338, %v1117_v40 }
 0x342   : > { %v1141_v42 = vpop.f32.mrf.mxu0 }
 0x343   : > { %v1148_v43 = vmul.f32 0.35355338, %v1141_v42  ;;  %v1155_v44 = vsel %vm1053_vm3, %v1147_v41, -inf }
 0x344   : > { %1156 = vmax.xlane.f32.xlu2 %v1155_v44  ;;  %v2831_v44 = vld [vmem:[%s4146_s7] sm:$0xff] }
 0x345   : > { %v1158_v45 = vsel %vm1053_vm3, %v1148_v43, -inf }
 0x346   : > { %1159 = vmax.xlane.f32.xlu0 %v1158_v45 }
 0x348   : > { %v1119_v47 = vpop.f32.mrf.mxu3 }
 0x34a   : > { %v1143_v48 = vpop.f32.mrf.mxu0 }
 0x34c   : > { %1150 = vmax.xlane.f32.xlu2 %v1149_v49 }
 0x350   : > { %v1093_v50 = vpop.f32.mrf.mxu2 }
 0x351   : > { %v1146_v51 = vmul.f32 0.35355338, %v1093_v50 }
 0x353   : > { %v1152_v52 = vsel %vm1053_vm3, %v1146_v51, -inf }
 0x354   : > { %1153 = vmax.xlane.f32.xlu1 %v1152_v52  ;;  %v3003_v52 = vld [vmem:[%s4147_s17] ss:$0 sm:$0xff] }
 0x358   : > { %v1095_v53 = vpop.f32.mrf.mxu2 }
 0x3b7   : > { %v1157_v54 = vpop.xlane.xlu2 %1156 }
 0x3b8   : > { %v1163_v55 = vsub.f32 %v1147_v41, %v1157_v54 }
 0x3b9   : > { %v1160_v56 = vpop.xlane.xlu0 %1159 }
 0x3ba   : > { %v1169_v57 = vmul.f32 1.442695, %v1163_v55  ;;  %v1164_v58 = vsub.f32 %v1148_v43, %v1160_v56  ;;  %v2832_v43 = vld [vmem:[%s4145_s22 + $0x8] sm:$0xff]  ;;  %s4157_s22 = sld [smem:[#allocation42_spill]] (!%p2812_p5) }
 0x3bc   : > { %3009 = vpow2.f32 %v1169_v57  ;;  %v1171_v59 = vmul.f32 1.442695, %v1164_v58  ;;  %v3371_v58 = vmov 32.0  }
 0x3be   : > { %3011 = vpow2.f32 %v1171_v59 }
 0x3bf   : > { %v1151_v5 = vpop.xlane.xlu2 %1150 }
 0x3c0   : > { %v1161_v6 = vsub.f32 %v1145_v46, %v1151_v5  ;;  %v2606_v5 = vld [vmem:[%s3713_s15 + $0x80] sm:$0xf] }
 0x3c2   : > { %v3010_v60 = vpop.eup %3009  ;;  %v1165_v7 = vmul.f32 1.442695, %v1161_v6  ;;  %v2857_v6 = vld [vmem:[%s3713_s15 + $0xbc] sm:$0xf0] }
 0x3c3   : > { %v1179_v61 = vsel %vm1053_vm3, %v3010_v60, 0.0 }
 0x3c4   : > { %v3012_v62 = vpop.eup %3011  ;;  %1180 = vadd.xlane.f32.xlu2 %v1179_v61 }
 0x3c5   : > { %v1182_v63 = vsel %vm1053_vm3, %v3012_v62, 0.0 }
 0x3c6   : > { %1183 = vadd.xlane.f32.xlu0 %v1182_v63 }
 0x3c7   : > { %v1154_v0 = vpop.xlane.xlu1 %1153 }
 0x3c8   : > { %v1162_v1 = vsub.f32 %v1146_v51, %v1154_v0 }
 0x3ca   : > { %v1167_v2 = vmul.f32 1.442695, %v1162_v1 }
 0x3cc   : > { %3013 = vpow2.f32 %v1167_v2 }
 0x3cd   : > { %3015 = vpow2.f32 %v1165_v7  ;;  %v2849_v7 = vld [vmem:[%s3713_s15 + $0x84] sm:$0xf] }
 0x3d2   : > { %v3014_v3 = vpop.eup %3013 }
 0x3d3   : > { %v1176_v4 = vsel %vm1053_vm3, %v3014_v3, 0.0  ;;  %v3016_v8 = vpop.eup %3015 }
 0x3d4   : > { %1177 = vadd.xlane.f32.xlu1 %v1176_v4  ;;  %v1173_v10 = vsel %vm1053_vm3, %v3016_v8, 0.0 }
 0x3da   : > { %1261 = vrot.lane.b32.xlu0 %v1123_v31, %s3367_s3 }
 0x3dc   : > { %1240 = vrot.lane.b32.xlu2 %v3778_v27, %s3367_s3 }
 0x3e2   : > { %1197 = vrot.lane.b32.xlu0 %v3772_v17, %s3367_s3 }
 0x3ed   : > { %1219 = vrot.lane.b32.xlu1 %v3775_v21, %s3367_s3 }
 0x417   : > { %1174 = vadd.xlane.f32.xlu1 %v1173_v10  ;;  %v2608_v10 = vld [vmem:[%s3713_s15 + $0xc0] sm:$0xf0] }
 0x437   : > { %v1181_v11 = vpop.xlane.xlu2 %1180 }
 0x438   : > { %3017 = vrcp.f32 %v1181_v11  ;;  %v2614_v11 = vld [vmem:[%s3713_s15 + $0x88] sm:$0xf] }
 0x439   : > { %v1184_v14 = vpop.xlane.xlu0 %1183 }
 0x43a   : > { %3019 = vrcp.f32 %v1184_v14 }
 0x43e   : > { %v3018_v12 = vpop.eup %3017 }
 0x43f   : > { %v1191_v13 = vmul.f32 %v3018_v12, %v3010_v60  ;;  %v1241_v15 = vpop.permute.xlu2 %1240  ;;  %v2858_v12 = vld [vmem:[%s3713_s15 + $0xc4] sm:$0xf0] }
 0x440   : > { %v1246_v16 = vsel %vm1202_vm4, %v1241_v15, 0  ;;  %v3020_v18 = vpop.eup %3019  ;;  %v2615_v14 = vor.u32 %v2858_v12, %v2614_v11  ;;  %v2850_v15 = vld [vmem:[%s3713_s15 + $0x8c] sm:$0xf]  ;;  %v2862_v12 = vld [vmem:[%s3713_s15 + $0xe4] sm:$0xf0] }
 0x441   : > { %1255 = vmatpush.bf16.msrb.mxu3 %v1246_v16  ;;  %v1195_v17 = vpack.c.bf16 %v1191_v13, %v1191_v13  ;;  %v1192_v19 = vmul.f32 %v3020_v18, %v3012_v62  ;;  %v2611_v13 = vor.u32 %v2849_v7, %v2608_v10  ;;  %v2616_v16 = vld [vmem:[%s3713_s15 + $0xc8] sm:$0xf0]  ;;  %v2542_v18 = vld [vmem:[%s3713_s15] sm:$0xf]  ;;  %v2853_v7 = vld [vmem:[%s3713_s15 + $0xa4] sm:$0xf] }
 0x442   : > { %v2646_v10 = vld [vmem:[%s3713_s15 + $0xa8] sm:$0xf] }
 0x443   : > { %v1196_v22 = vpack.c.bf16 %v1192_v19, %v1192_v19  ;;  %v2841_v19 = vld [vmem:[%s3713_s15 + $0x3c] sm:$0xf0] }
 0x444   : > { %2529 = vmatmul.msk.bf16.vlgmr.msrb.gmra.mxu3 %vm1053_vm3, %v1195_v17  ;;  %v2619_v17 = vor.u32 %v2850_v15, %v2616_v16 }
 0x445   : > { %1586 = vmatpush.bf16.msra.mxu3 %v2611_v13  ;;  %v2854_v13 = vld [vmem:[%s3713_s15 + $0xac] sm:$0xf] }
 0x447   : > { %v1178_v23 = vpop.xlane.xlu1 %1177 }
 0x448   : > { %3021 = vrcp.f32 %v1178_v23  ;;  %v2550_v23 = vld [vmem:[%s3713_s15 + $0x8] sm:$0xf] }
 0x44c   : > { %v1262_v20 = vpop.permute.xlu0 %1261 }
 0x44d   : > { %v1267_v21 = vsel %vm1202_vm4, %v1262_v20, 0  ;;  %v2833_v20 = vld [vmem:[%s3713_s15 + $0x4] sm:$0xf] }
 0x44e   : > { %1276 = vmatpush.bf16.msra.mxu0 %v1267_v21  ;;  %v3022_v26 = vpop.eup %3021  ;;  %v2543_v21 = vor.u32 %v2841_v19, %v2542_v18  ;;  %v2845_v18 = vld [vmem:[%s3713_s15 + $0x5c] sm:$0xf0]  ;;  %v2647_v19 = vor.u32 %v2862_v12, %v2646_v10 }
 0x44f   : > { %v1190_v27 = vmul.f32 %v3022_v26, %v3014_v3  ;;  %v2686_v12 = vld [vmem:[%s3720_s20] sm:$0xf] }
 0x451   : > { %2530 = vmatmul.msk.bf16.vlgmr.msra.gmra.mxu0 %vm1053_vm3, %v1196_v22  ;;  %v1194_v30 = vpack.c.bf16 %v1190_v27, %v1190_v27  ;;  %v2544_v22 = vld [vmem:[%s3713_s15 + $0x40] sm:$0xf0]  ;;  %v2834_v27 = vld [vmem:[%s3713_s15 + $0xc] sm:$0xf] }
 0x452   : > { %1599 = vmatpush.bf16.msrb.mxu0 %v2615_v14  ;;  %v2648_v14 = vld [vmem:[%s3713_s15 + $0xe8] sm:$0xf0] }
 0x454   : > { %v1198_v24 = vpop.permute.xlu0 %1197 }
 0x455   : > { %v1204_v25 = vsel %vm1202_vm4, %v1198_v24, 0  ;;  %v2842_v24 = vld [vmem:[%s3713_s15 + $0x44] sm:$0xf0] }
 0x456   : > { %1213 = vmatpush.bf16.msrb.mxu1 %v1204_v25  ;;  %v2547_v25 = vor.u32 %v2833_v20, %v2544_v22  ;;  %v2551_v26 = vor.u32 %v2842_v24, %v2550_v23  ;;  %v2651_v20 = vor.u32 %v2854_v13, %v2648_v14  ;;  %v2576_v22 = vld [vmem:[%s3713_s15 + $0x60] sm:$0xf0]  ;;  %v2582_v23 = vld [vmem:[%s3713_s15 + $0x28] sm:$0xf]  ;;  %v2873_v13 = vld [vmem:[%s3720_s20 + $0x3c] sm:$0xf0] }
 0x457   : > { %v2846_v24 = vld [vmem:[%s3713_s15 + $0x64] sm:$0xf0]  ;;  %v2865_v14 = vld [vmem:[%s3720_s20 + $0x4] sm:$0xf] }
 0x458   : > { %1587 = vmatpush.bf16.msra.mxu3 %v2547_v25  ;;  %1600 = vmatpush.bf16.msrb.mxu0 %v2551_v26  ;;  %v2838_v25 = vld [vmem:[%s3713_s15 + $0x2c] sm:$0xf] }
 0x459   : > { %v2584_v26 = vld [vmem:[%s3713_s15 + $0x68] sm:$0xf0] }
 0x45a   : > { %1324 = vmatpush.bf16.msra.mxu1 %v2832_v43  ;;  %v2558_v43 = vld [vmem:[%s3713_s15 + $0x10] sm:$0xf] }
 0x45e   : > { %1325 = vmatpush.bf16.msra.mxu1 %v2831_v44 }
 0x45f   : > { %v1220_v28 = vpop.permute.xlu1 %1219 }
 0x460   : > { %v1225_v29 = vsel %vm1202_vm4, %v1220_v28, 0  ;;  %v2552_v28 = vld [vmem:[%s3713_s15 + $0x48] sm:$0xf0] }
 0x461   : > { %1234 = vmatpush.bf16.msrb.mxu2 %v1225_v29  ;;  %v2555_v29 = vor.u32 %v2834_v27, %v2552_v28 }
 0x464   : > { %2528 = vmatmul.msk.bf16.vlgmr.msrb.gmra.mxu2 %vm1053_vm3, %v1194_v30 }
 0x48a   : > { %v1175_v31 = vpop.xlane.xlu1 %1174 }
 0x48b   : > { %3023 = vrcp.f32 %v1175_v31  ;;  %v2622_v31 = vld [vmem:[%s3713_s15 + $0x90] sm:$0xf] }
 0x48c   : > { %3025 = vrcp.f32 %v3371_v58 }
 0x491   : > { %v3024_v32 = vpop.eup %3023 }
 0x492   : > { %v1189_v33 = vmul.f32 %v3024_v32, %v3016_v8  ;;  %v3026_v59 = vpop.eup %3025  ;;  %v2607_v8 = vor.u32 %v2857_v6, %v2606_v5  ;;  %v2859_v32 = vld [vmem:[%s3713_s15 + $0xcc] sm:$0xf0]  ;;  %v2638_v5 = vld [vmem:[%s3713_s15 + $0xa0] sm:$0xf] }
 0x493   : > { %v1336_v60 = vmul.f32 32.0, %v3026_v59  ;;  %vm1340_vm7 = vweird.f32 %v3026_v59  ;;  %v2861_v6 = vld [vmem:[%s3713_s15 + $0xdc] sm:$0xf0] }
 0x494   : > { %v1193_v34 = vpack.c.bf16 %v1189_v33, %v1189_v33  ;;  %1573 = vmatpush.bf16.msra.mxu2 %v2607_v8  ;;  %v2851_v33 = vld [vmem:[%s3713_s15 + $0x94] sm:$0xf]  ;;  %v2640_v8 = vld [vmem:[%s3713_s15 + $0xe0] sm:$0xf0]  ;;  %v2639_v15 = vor.u32 %v2861_v6, %v2638_v5  ;;  %v2874_v5 = vld [vmem:[%s3720_s20 + $0x44] sm:$0xf0] }
 0x495   : > { %v1337_v61 = vsub.f32 1.0, %v1336_v60  ;;  %v2643_v16 = vor.u32 %v2853_v7, %v2640_v8  ;;  %v2866_v6 = vld [vmem:[%s3720_s20 + $0xc] sm:$0xf] }
 0x496   : > { %2527 = vmatmul.msk.bf16.vlgmr.msrb.gmra.mxu1 %vm1053_vm3, %v1193_v34  ;;  %v2696_v8 = vld [vmem:[%s3720_s20 + $0x48] sm:$0xf0] }
 0x497   : > { %v1338_v62 = vmul.f32 %v3026_v59, %v1337_v61  ;;  %1612 = vmatpush.bf16.msrb.mxu1 %v2619_v17  ;;  %v2574_v17 = vld [vmem:[%s3713_s15 + $0x20] sm:$0xf]  ;;  %v2699_v10 = vor.u32 %v2866_v6, %v2696_v8 }
 0x498   : > { %1574 = vmatpush.bf16.msra.mxu2 %v2543_v21  ;;  %v2837_v21 = vld [vmem:[%s3713_s15 + $0x24] sm:$0xf]  ;;  %v2575_v27 = vor.u32 %v2845_v18, %v2574_v17  ;;  %v2774_v17 = vld [vmem:[%s3720_s20 + $0x98] sm:$0xf] }
 0x499   : > { %v1339_v63 = vadd.f32 %v3026_v59, %v1338_v62  ;;  %v2579_v28 = vor.u32 %v2837_v21, %v2576_v22  ;;  %v2892_v18 = vld [vmem:[%s3720_s20 + $0xd4] sm:$0xf0]  ;;  %v2776_v21 = vld [vmem:[%s3720_s20 + $0xd8] sm:$0xf0] }
 0x49b   : > { %v3818_v0 = vsel %vm1340_vm7, %v3026_v59, %v1339_v63  ;;  %1613 = vmatpush.bf16.msrb.mxu1 %v2555_v29  ;;  %v3004_v63 = vld [vmem:[%s871_s19] ss:$0 sm:$0xff]  ;;  %v2583_v29 = vor.u32 %v2846_v24, %v2582_v23  ;;  %v2766_v23 = vld [vmem:[%s3720_s20 + $0x90] sm:$0xf] }
 0x49c   : > { %v2891_v24 = vld [vmem:[%s3720_s20 + $0xcc] sm:$0xf0] }
 0x4c7   : > { %v1257_v35 = vpop.f32.mrf.mxu3 }
 0x4c8   : > { %1287 = vrot.lane.b32.xlu0 %v1257_v35, %s3368_s14  ;;  %v2623_v35 = vor.u32 %v2859_v32, %v2622_v31  ;;  %v2654_v31 = vld [vmem:[%s3713_s15 + $0xb0] sm:$0xf] }
 0x4c9   : > { %v2863_v32 = vld [vmem:[%s3713_s15 + $0xec] sm:$0xf0] }
 0x4ca   : > { %1625 = vmatpush.bf16.msrb.mxu2 %v2623_v35  ;;  %v2662_v35 = vld [vmem:[%s3713_s15 + $0xb8] sm:$0xf] }
 0x4ce   : > { %v1278_v36 = vpop.f32.mrf.mxu0 }
 0x4cf   : > { %v1259_v37 = vpop.f32.mrf.mxu3 }
 0x4d0   : > { %v2630_v37 = vld [vmem:[%s3713_s15 + $0x98] sm:$0xf] }
 0x4d6   : > { %v1280_v38 = vpop.f32.mrf.mxu0 }
 0x4d7   : > { %v2860_v38 = vld [vmem:[%s3713_s15 + $0xd4] sm:$0xf0] }
 0x4e7   : > { %v1236_v39 = vpop.f32.mrf.mxu2 }
 0x4e8   : > { %1283 = vrot.lane.b32.xlu2 %v1236_v39, %s3369_s21  ;;  %s4156_s21 = sld [smem:[#allocation40_spill]] (!%p2812_p5) }
 0x4ef   : > { %v1238_v40 = vpop.f32.mrf.mxu2 }
 0x4f0   : > { %1291 = vrot.lane.b32.xlu2 %v1278_v36, %s3370_s8  ;;  %v2624_v36 = vld [vmem:[%s3713_s15 + $0xd0] sm:$0xf0]  ;;  %v2631_v40 = vor.u32 %v2860_v38, %v2630_v37  ;;  %v2856_v37 = vld [vmem:[%s3713_s15 + $0xbc] sm:$0xf] }
 0x4f1   : > { %v2627_v39 = vor.u32 %v2851_v33, %v2624_v36  ;;  %v2855_v33 = vld [vmem:[%s3713_s15 + $0xb4] sm:$0xf]  ;;  %v2864_v36 = vld [vmem:[%s3713_s15 + $0xf4] sm:$0xf0]  ;;  %v2664_v38 = vld [vmem:[%s3713_s15 + $0xf8] sm:$0xf0] }
 0x4f2   : > { %1651 = vmatpush.bf16.msra.mxu0 %v2631_v40 }
 0x4f3   : > { %1638 = vmatpush.bf16.msrb.mxu3 %v2627_v39  ;;  %v2655_v39 = vor.u32 %v2863_v32, %v2654_v31  ;;  %v2868_v32 = vld [vmem:[%s3720_s20 + $0x1c] sm:$0xf] }
 0x513   : > { %v1215_v41 = vpop.f32.mrf.mxu1 }
 0x51b   : > { %v1217_v42 = vpop.f32.mrf.mxu1 }
 0x51c   : > { %v2632_v42 = vld [vmem:[%s3713_s15 + $0xd8] sm:$0xf0] }
 0x53a   : > { %v1288_v47 = vpop.permute.xlu0 %1287 }
 0x542   : > { %v1284_v45 = vpop.permute.xlu2 %1283 }
 0x543   : > { %v1294_v46 = vsel %vm1053_vm3, %v1215_v41, %v1284_v45  ;;  %v2852_v41 = vld [vmem:[%s3713_s15 + $0x9c] sm:$0xf] }
 0x544   : > { %v1296_v49 = vsel %vm1295_vm5, %v1294_v46, %v1288_v47  ;;  %v2635_v45 = vor.u32 %v2852_v41, %v2632_v42  ;;  %v2843_v46 = vld [vmem:[%s3713_s15 + $0x4c] sm:$0xf0]  ;;  %v2835_v47 = vld [vmem:[%s3713_s15 + $0x14] sm:$0xf] }
 0x545   : > { %v2590_v41 = vld [vmem:[%s3713_s15 + $0x30] sm:$0xf] }
 0x546   : > { %v2847_v42 = vld [vmem:[%s3713_s15 + $0x6c] sm:$0xf0] }
 0x54a   : > { %v1292_v48 = vpop.permute.xlu2 %1291 }
 0x54b   : > { %v1298_v50 = vsel %vm1297_vm6, %v1296_v49, %v1292_v48  ;;  %v2559_v48 = vor.u32 %v2843_v46, %v2558_v43  ;;  %v2560_v49 = vld [vmem:[%s3713_s15 + $0x50] sm:$0xf0]  ;;  %v2663_v43 = vor.u32 %v2864_v36, %v2662_v35  ;;  %v2702_v35 = vld [vmem:[%s3720_s20 + $0x10] sm:$0xf] }
 0x54c   : > { %v1299_v51 = vpack.c.bf16 %v1298_v50, %v1298_v50  ;;  %v2566_v50 = vld [vmem:[%s3713_s15 + $0x18] sm:$0xf]  ;;  %v2592_v46 = vld [vmem:[%s3713_s15 + $0x70] sm:$0xf0]  ;;  %v2875_v36 = vld [vmem:[%s3720_s20 + $0x4c] sm:$0xf0] }
 0x54d   : > { %1626 = vmatpush.bf16.msrb.mxu2 %v2559_v48  ;;  %v2848_v48 = vld [vmem:[%s3713_s15 + $0x74] sm:$0xf0] }
 0x54e   : > { %2539 = vmatmul.msk.bf16.vlgmr.msra.gmra.mxu1 %vm1017_vm2, %v1299_v51  ;;  %v2844_v51 = vld [vmem:[%s3713_s15 + $0x54] sm:$0xf0] }
 0x54f   : > { %1664 = vmatpush.bf16.msra.mxu1 %v2635_v45  ;;  %v2839_v45 = vld [vmem:[%s3713_s15 + $0x34] sm:$0xf] }
 0x5cb   : > { %v1327_v53 = vpop.f32.mrf.mxu1 }
 0x5cc   : > { %v1328_v54 = vadd.f32 %v3003_v52, %v1327_v53  ;;  %v2563_v52 = vor.u32 %v2835_v47, %v2560_v49  ;;  %v2567_v53 = vor.u32 %v2844_v51, %v2566_v50  ;;  %v2598_v47 = vld [vmem:[%s3713_s15 + $0x38] sm:$0xf]  ;;  %v2840_v49 = vld [vmem:[%s3713_s15 + $0x3c] sm:$0xf]  ;;  %v2591_v51 = vor.u32 %v2847_v42, %v2590_v41 }
 0x5cd   : > { %v2600_v50 = vld [vmem:[%s3713_s15 + $0x78] sm:$0xf0] }
 0x5ce   : > { %v1331_v55 = vadd.f32 %v1328_v54, %v3767_v9  ;;  %v2836_v54 = vld [vmem:[%s3713_s15 + $0x1c] sm:$0xf]  ;;  %1639 = vmatpush.bf16.msrb.mxu3 %v2563_v52  ;;  %1652 = vmatpush.bf16.msra.mxu0 %v2567_v53  ;;  %v2595_v52 = vor.u32 %v2839_v45, %v2592_v46  ;;  %v2599_v53 = vor.u32 %v2848_v48, %v2598_v47  ;;  %v2790_v46 = vld [vmem:[%s3720_s20 + $0xa8] sm:$0xf] }
 0x5d0   : > { %v1332_v56 = vsel %vm1017_vm2, %v1331_v55, 0.0 }
 0x5d1   : > { %1333 = vadd.xlane.f32.xlu0 %v1332_v56 }
 0x5d3   : > { %v1329_v57 = vpop.f32.mrf.mxu1 }
 0x644   : > { %v1334_v9 = vpop.xlane.xlu0 %1333 }
 0x645   : > { %v1342_v1 = vmul.f32 %v3818_v0, %v1334_v9 }
 0x647   : > { %v3821_v2 = vsub.f32 %v1331_v55, %v1342_v1  ;;  %v2568_v55 = vld [vmem:[%s3713_s15 + $0x58] sm:$0xf0]  ;;  %v3005_v1 = vld [vmem:[%s874_s16] ss:$0 sm:$0xff] }
 0x648   : > { %v2571_v56 = vor.u32 %v2836_v54, %v2568_v55  ;;  %v2603_v54 = vor.u32 %v2840_v49, %v2600_v50  ;;  %v2758_v55 = vld [vmem:[%s3720_s20 + $0x88] sm:$0xf]  ;;  %v2886_v50 = vld [vmem:[%s3720_s20 + $0xac] sm:$0xf] }
 0x649   : > { %v1344_v3 = vmul.f32 %v3821_v2, %v3821_v2  ;;  %v2894_v49 = vld [vmem:[%s3720_s20 + $0xe4] sm:$0xf0] }
 0x64a   : > { %1665 = vmatpush.bf16.msra.mxu1 %v2571_v56  ;;  %v2890_v56 = vld [vmem:[%s3720_s20 + $0xc4] sm:$0xf0] }
 0x64b   : > { %v1345_v4 = vsel %vm1017_vm2, %v1344_v3, 0.0 }
 0x64c   : > { %1346 = vadd.xlane.f32.xlu2 %v1345_v4 }
 0x6bf   : > { %v1347_v30 = vpop.xlane.xlu2 %1346 }
 0x6c0   : > { %v1348_v34 = vmul.f32 %v1347_v30, %v3818_v0  ;;  %v2587_v30 = vor.u32 %v2838_v25, %v2584_v26  ;;  %v2883_v25 = vld [vmem:[%s3720_s20 + $0x94] sm:$0xf]  ;;  %v2767_v26 = vor.u32 %v2891_v24, %v2766_v23  ;;  %v2718_v24 = vld [vmem:[%s3720_s20 + $0x20] sm:$0xf] }
 0x6c2   : > { %v1349_v44 = vadd.f32 1e-05, %v1348_v34  ;;  %v2656_v34 = vld [vmem:[%s3713_s15 + $0xf0] sm:$0xf0]  ;;  %s4150_s15 = scalar_lea.vmem [#allocation11], %s3699_s1  ;;  %s4152_s1 = scalar_lea.vmem [#allocation14], %s3696_s30 }
 0x6c3   : > { %v2659_v40 = vor.u32 %v2855_v33, %v2656_v34  ;;  %v2712_v33 = vld [vmem:[%s3720_s20 + $0x58] sm:$0xf0]  ;;  %v3974_v41 = vld [vmem:[%s4150_s15] sm:$0xff]  ;;  %s4151_s19 = smov %s4150_s15 }
 0x6c4   : > { %3027 = vrsqrt.f32 %v1349_v44  ;;  %vm1356_vm9 = vweird.f32 %v1349_v44  ;;  %v2715_v34 = vor.u32 %v2868_v32, %v2712_v33  ;;  %v1374_v42 = vperm.slane %v3974_v41, 2 }
 0x6c5   : > { %v1379_v23 = vperm.slane %v3974_v41, 7 }
 0x6ca   : > { %v3028_v57 = vpop.eup %3027 }
 0x6cb   : > { %v1351_v58 = vmul.f32 %v3028_v57, %v1349_v44  ;;  %vm1357_vm8 = vweird.f32 %v3028_v57  ;;  %v2667_v44 = vor.u32 %v2856_v37, %v2664_v38  ;;  %v2867_v37 = vld [vmem:[%s3720_s20 + $0x14] sm:$0xf]  ;;  %v2703_v38 = vor.u32 %v2875_v36, %v2702_v35  ;;  %v2896_v35 = vld [vmem:[%s3720_s20 + $0xf4] sm:$0xf0]  ;;  %v2888_v36 = vld [vmem:[%s3720_s20 + $0xbc] sm:$0xf] }
 0x6cc   : > { %vm1358_vm10 = vmor %vm1356_vm9, %vm1357_vm8 }
 0x6cd   : > { %v1352_v59 = vmul.f32 %v3028_v57, %v1351_v58  ;;  %v2760_v58 = vld [vmem:[%s3720_s20 + $0xc8] sm:$0xf0] }
 0x6cf   : > { %v1353_v60 = vmul.f32 0.5, %v1352_v59  ;;  %v2750_v59 = vld [vmem:[%s3720_s20 + $0x80] sm:$0xf] }
 0x6d1   : > { %v1354_v61 = vsub.f32 1.5, %v1353_v60  ;;  %v2889_v60 = vld [vmem:[%s3720_s20 + $0xbc] sm:$0xf0] }
 0x6d3   : > { %v1355_v62 = vmul.f32 %v3028_v57, %v1354_v61  ;;  %v2881_v61 = vld [vmem:[%s3720_s20 + $0x84] sm:$0xf] }
 0x6d5   : > { %v1359_v9 = vsel %vm1358_vm10, %v3028_v57, %v1355_v62  ;;  %v2882_v57 = vld [vmem:[%s3720_s20 + $0x8c] sm:$0xf]  ;;  %v2752_v62 = vld [vmem:[%s3720_s20 + $0xc0] sm:$0xf0] }
 0x6d6   : > { %v1360_v3 = vmul.f32 %v1359_v9, %v3821_v2  ;;  %v2763_v9 = vor.u32 %v2882_v57, %v2760_v58 }
 0x6d8   : > { %v1364_v4 = vmul.f32 %v3004_v63, %v1360_v3  ;;  %v2759_v63 = vor.u32 %v2890_v56, %v2758_v55  ;;  %v2755_v3 = vor.u32 %v2881_v61, %v2752_v62  ;;  %v2791_v56 = vor.u32 %v2894_v49, %v2790_v46  ;;  %v2782_v62 = vld [vmem:[%s3720_s20 + $0xa0] sm:$0xf]  ;;  %v2798_v49 = vld [vmem:[%s3720_s20 + $0xb0] sm:$0xf] }
 0x6da   : > { %v3875_v11 = vadd.f32 %v3005_v1, %v1364_v4  ;;  %v2751_v1 = vor.u32 %v2889_v60, %v2750_v59  ;;  %v2694_v4 = vld [vmem:[%s3720_s20 + $0x8] sm:$0xf] }
 0x6db   : > { %v2695_v7 = vor.u32 %v2874_v5, %v2694_v4  ;;  %v2784_v4 = vld [vmem:[%s3720_s20 + $0xe0] sm:$0xf0] }
 0x6dc   : > { %v3882_v2 = vpack.c.bf16 %v3875_v11, %v3875_v11 }
 0x6de   : > { %2668 = vmatmul.msk.bf16.vlgmr.msra.gmra.mxu2 %vm1017_vm2, %v3882_v2  ;;  %2669 = vmatmul.msk.bf16.vlgmr.msra.gmra.mxu3 %vm1017_vm2, %v3882_v2 }
 0x6df   : > { %2670 = vmatmul.msk.bf16.vlgmr.msrb.gmra.mxu0 %vm1017_vm2, %v3882_v2  ;;  %2671 = vmatmul.msk.bf16.vlgmr.msrb.gmra.mxu1 %vm1017_vm2, %v3882_v2 }
 0x6e0   : > { %1677 = vmatpush.bf16.msra.mxu2 %v2639_v15  ;;  %1690 = vmatpush.bf16.msra.mxu3 %v2643_v16  ;;  %v2687_v15 = vor.u32 %v2873_v13, %v2686_v12  ;;  %v2688_v16 = vld [vmem:[%s3720_s20 + $0x40] sm:$0xf0] }
 0x6e1   : > { %1703 = vmatpush.bf16.msrb.mxu0 %v2647_v19  ;;  %1716 = vmatpush.bf16.msrb.mxu1 %v2651_v20  ;;  %v2775_v19 = vor.u32 %v2892_v18, %v2774_v17  ;;  %v2884_v20 = vld [vmem:[%s3720_s20 + $0x9c] sm:$0xf] }
 0x6e2   : > { %v2779_v22 = vor.u32 %v2884_v20, %v2776_v21 }
 0x6e4   : > { %1678 = vmatpush.bf16.msra.mxu2 %v2575_v27  ;;  %1691 = vmatpush.bf16.msra.mxu3 %v2579_v28  ;;  %v2768_v27 = vld [vmem:[%s3720_s20 + $0xd0] sm:$0xf0] }
 0x6e5   : > { %1704 = vmatpush.bf16.msrb.mxu0 %v2583_v29  ;;  %1717 = vmatpush.bf16.msrb.mxu1 %v2587_v30  ;;  %v2771_v28 = vor.u32 %v2883_v25, %v2768_v27  ;;  %v2710_v29 = vld [vmem:[%s3720_s20 + $0x18] sm:$0xf]  ;;  %v2877_v25 = vld [vmem:[%s3720_s20 + $0x5c] sm:$0xf0]  ;;  %v2720_v27 = vld [vmem:[%s3720_s20 + $0x60] sm:$0xf0] }
 0x6e6   : > { %v2876_v30 = vld [vmem:[%s3720_s20 + $0x54] sm:$0xf0]  ;;  %v2719_v33 = vor.u32 %v2877_v25, %v2718_v24 }
 0x6e7   : > { %v2711_v31 = vor.u32 %v2876_v30, %v2710_v29  ;;  %v2806_v30 = vld [vmem:[%s3720_s20 + $0xb8] sm:$0xf] }
 0x6ee   : > { %2672 = vmatmul.msk.bf16.vlgmr.msrb.gmra.mxu2 %vm1017_vm2, %v3882_v2  ;;  %2673 = vmatmul.msk.bf16.vlgmr.msrb.gmra.mxu3 %vm1017_vm2, %v3882_v2 }
 0x6ef   : > { %2674 = vmatmul.msk.bf16.vlgmr.msra.gmra.mxu0 %vm1017_vm2, %v3882_v2  ;;  %2675 = vmatmul.msk.bf16.vlgmr.msra.gmra.mxu1 %vm1017_vm2, %v3882_v2 }
 0x6f0   : > { %1729 = vmatpush.bf16.msrb.mxu2 %v2655_v39  ;;  %1742 = vmatpush.bf16.msrb.mxu3 %v2659_v40  ;;  %v2704_v39 = vld [vmem:[%s3720_s20 + $0x50] sm:$0xf0] }
 0x6f1   : > { %1755 = vmatpush.bf16.msra.mxu0 %v2663_v43  ;;  %1768 = vmatpush.bf16.msra.mxu1 %v2667_v44  ;;  %v2707_v40 = vor.u32 %v2867_v37, %v2704_v39  ;;  %v1375_v43 = vperm.slane %v3974_v41, 3  ;;  %v2808_v37 = vld [vmem:[%s3720_s20 + $0xf8] sm:$0xf0]  ;;  %v1377_v39 = vperm.slane %v3974_v41, 5 }
 0x6f4   : > { %1730 = vmatpush.bf16.msrb.mxu2 %v2591_v51  ;;  %1743 = vmatpush.bf16.msrb.mxu3 %v2595_v52  ;;  %v2792_v51 = vld [vmem:[%s3720_s20 + $0xe8] sm:$0xf0]  ;;  %v1372_v52 = vperm.slane %v3974_v41, 0 }
 0x6f5   : > { %1756 = vmatpush.bf16.msra.mxu0 %v2599_v53  ;;  %1769 = vmatpush.bf16.msra.mxu1 %v2603_v54  ;;  %v1373_v53 = vperm.slane %v3974_v41, 1  ;;  %v2795_v57 = vor.u32 %v2886_v50, %v2792_v51 }
 0x6fe   : > { %2676 = vmatmul.msk.bf16.vlgmr.msra.gmra.mxu2 %vm1017_vm2, %v3882_v2  ;;  %2677 = vmatmul.msk.bf16.vlgmr.msra.gmra.mxu3 %vm1017_vm2, %v3882_v2 }
 0x6ff   : > { %2678 = vmatmul.msk.bf16.vlgmr.msrb.gmra.mxu0 %vm1017_vm2, %v3882_v2  ;;  %2679 = vmatmul.msk.bf16.vlgmr.msrb.gmra.mxu1 %vm1017_vm2, %v3882_v2 }
 0x700   : > { %2002 = vmatpush.bf16.xpose.msrb.mxu0 %v2759_v63  ;;  %2015 = vmatpush.bf16.xpose.msrb.mxu1 %v2763_v9 }
 0x701   : > { %1976 = vmatpush.bf16.xpose.msra.mxu2 %v2751_v1  ;;  %1989 = vmatpush.bf16.xpose.msra.mxu3 %v2755_v3  ;;  %v2893_v1 = vld [vmem:[%s3720_s20 + $0xdc] sm:$0xf0]  ;;  %v2885_v3 = vld [vmem:[%s3720_s20 + $0xa4] sm:$0xf] }
 0x702   : > { %v2783_v12 = vor.u32 %v2893_v1, %v2782_v62  ;;  %v2787_v13 = vor.u32 %v2885_v3, %v2784_v4  ;;  %v2872_v62 = vld [vmem:[%s3720_s20 + $0x3c] sm:$0xf] }
 0x703   : > { %v4014_v3 = vld [vmem:[%s4151_s19 + $0x8] sm:$0xff] }
 0x708   : > { %2003 = vmatpush.bf16.xpose.msrb.mxu0 %v2695_v7  ;;  %2016 = vmatpush.bf16.xpose.msrb.mxu1 %v2699_v10  ;;  %v2726_v10 = vld [vmem:[%s3720_s20 + $0x28] sm:$0xf] }
 0x709   : > { %1977 = vmatpush.bf16.xpose.msra.mxu2 %v2687_v15  ;;  %v2870_v15 = vld [vmem:[%s3720_s20 + $0x2c] sm:$0xf] }
 0x70e   : > { %2680 = vmatmul.msk.bf16.vlgmr.msrb.gmra.mxu2 %vm1017_vm2, %v3882_v2  ;;  %2681 = vmatmul.msk.bf16.vlgmr.msrb.gmra.mxu3 %vm1017_vm2, %v3882_v2 }
 0x70f   : > { %2682 = vmatmul.msk.bf16.vlgmr.msra.gmra.mxu0 %vm1017_vm2, %v3882_v2  ;;  %2683 = vmatmul.msk.bf16.vlgmr.msra.gmra.mxu1 %vm1017_vm2, %v3882_v2  ;;  %v2691_v2 = vor.u32 %v2865_v14, %v2688_v16  ;;  %v2878_v14 = vld [vmem:[%s3720_s20 + $0x64] sm:$0xf0]  ;;  %v2728_v16 = vld [vmem:[%s3720_s20 + $0x68] sm:$0xf0] }
 0x710   : > { %2054 = vmatpush.bf16.xpose.msra.mxu0 %v2775_v19  ;;  %2067 = vmatpush.bf16.xpose.msra.mxu1 %v2779_v22  ;;  %v2727_v18 = vor.u32 %v2878_v14, %v2726_v10  ;;  %v2731_v19 = vor.u32 %v2870_v15, %v2728_v16  ;;  %v1378_v22 = vperm.slane %v3974_v41, 6  ;;  %v1383_v10 = vperm.slane %v4014_v3, 3  ;;  %v2871_v14 = vld [vmem:[%s3720_s20 + $0x34] sm:$0xf] }
 0x711   : > { %1990 = vmatpush.bf16.xpose.msra.mxu3 %v2691_v2  ;;  %2028 = vmatpush.bf16.xpose.msrb.mxu2 %v2767_v26  ;;  %v2869_v26 = vld [vmem:[%s3720_s20 + $0x24] sm:$0xf]  ;;  %v2736_v15 = vld [vmem:[%s3720_s20 + $0x70] sm:$0xf0] }
 0x718   : > { %2055 = vmatpush.bf16.xpose.msra.mxu0 %v2711_v31  ;;  %2068 = vmatpush.bf16.xpose.msra.mxu1 %v2715_v34  ;;  %v2723_v34 = vor.u32 %v2869_v26, %v2720_v27 }
 0x719   : > { %2041 = vmatpush.bf16.xpose.msrb.mxu3 %v2771_v28  ;;  %2029 = vmatpush.bf16.xpose.msrb.mxu2 %v2703_v38  ;;  %v1376_v38 = vperm.slane %v3974_v41, 4  ;;  %v2887_v41 = vld [vmem:[%s3720_s20 + $0xb4] sm:$0xf] }
 0x721   : > { %2042 = vmatpush.bf16.xpose.msrb.mxu3 %v2707_v40 }
 0x75c   : > { %v1602_v44 = vpop.f32.mrf.mxu0  ;;  %v1615_v45 = vpop.f32.mrf.mxu1 }
 0x75d   : > { %v1603_v47 = vadd.f32 %v1602_v44, %v1374_v42  ;;  %v1616_v48 = vadd.f32 %v1615_v45, %v1375_v43  ;;  %v2807_v43 = vor.u32 %v2896_v35, %v2806_v30  ;;  %v2811_v44 = vor.u32 %v2888_v36, %v2808_v37 }
 0x75f   : > { %v1777_v54 = vmax.f32 %v1603_v47, 0.0  ;;  %v1778_v55 = vmax.f32 %v1616_v48, 0.0 }
 0x761   : > { %v1793_v58 = vpack.c.bf16 %v1777_v54, %v1777_v54  ;;  %v1794_v59 = vpack.c.bf16 %v1778_v55, %v1778_v55  ;;  %v1576_v60 = vpop.f32.mrf.mxu2  ;;  %v1589_v61 = vpop.f32.mrf.mxu3 }
 0x762   : > { %v1577_v63 = vadd.f32 %v1576_v60, %v1372_v52  ;;  %v1590_v9 = vadd.f32 %v1589_v61, %v1373_v53  ;;  %v2895_v52 = vld [vmem:[%s3720_s20 + $0xec] sm:$0xf0]  ;;  %v2800_v53 = vld [vmem:[%s3720_s20 + $0xf0] sm:$0xf0]  ;;  %v2880_v61 = vld [vmem:[%s3720_s20 + $0x74] sm:$0xf0] }
 0x763   : > { %2004 = vmatmul.bf16.vlgmr.msrb.gmra.mxu0 %v1793_v58  ;;  %2017 = vmatmul.bf16.vlgmr.msrb.gmra.mxu1 %v1794_v59  ;;  %v2742_v58 = vld [vmem:[%s3720_s20 + $0x38] sm:$0xf]  ;;  %v2799_v59 = vor.u32 %v2895_v52, %v2798_v49  ;;  %v2803_v60 = vor.u32 %v2887_v41, %v2800_v53 }
 0x764   : > { %v1775_v5 = vmax.f32 %v1577_v63, 0.0  ;;  %v1776_v6 = vmax.f32 %v1590_v9, 0.0  ;;  %v1604_v7 = vpop.f32.mrf.mxu0  ;;  %v1617_v8 = vpop.f32.mrf.mxu1  ;;  %2106 = vmatpush.bf16.xpose.msrb.mxu0 %v2791_v56  ;;  %2119 = vmatpush.bf16.xpose.msrb.mxu1 %v2795_v57  ;;  %v2744_v63 = vld [vmem:[%s3720_s20 + $0x78] sm:$0xf0]  ;;  %v2743_v4 = vor.u32 %v2880_v61, %v2742_v58 }
 0x765   : > { %v1382_v8 = vperm.slane %v4014_v3, 2 }
 0x766   : > { %v1791_v2 = vpack.c.bf16 %v1775_v5, %v1775_v5  ;;  %v1792_v17 = vpack.c.bf16 %v1776_v6, %v1776_v6  ;;  %v2747_v5 = vor.u32 %v2872_v62, %v2744_v63 }
 0x768   : > { %1978 = vmatmul.bf16.vlgmr.msra.gmra.mxu2 %v1791_v2  ;;  %1991 = vmatmul.bf16.vlgmr.msra.gmra.mxu3 %v1792_v17 }
 0x769   : > { %v1578_v20 = vpop.f32.mrf.mxu2  ;;  %v1591_v21 = vpop.f32.mrf.mxu3  ;;  %2080 = vmatpush.bf16.xpose.msra.mxu2 %v2783_v12  ;;  %2093 = vmatpush.bf16.xpose.msra.mxu3 %v2787_v13  ;;  %v2734_v12 = vld [vmem:[%s3720_s20 + $0x30] sm:$0xf] }
 0x76a   : > { %v2879_v13 = vld [vmem:[%s3720_s20 + $0x6c] sm:$0xf0]  ;;  %v2739_v20 = vor.u32 %v2871_v14, %v2736_v15  ;;  %v1380_v21 = vperm.slane %v4014_v3, 0 }
 0x76c   : > { %v1654_v28 = vpop.f32.mrf.mxu0  ;;  %v1667_v29 = vpop.f32.mrf.mxu1  ;;  %2107 = vmatpush.bf16.xpose.msrb.mxu0 %v2727_v18  ;;  %2120 = vmatpush.bf16.xpose.msrb.mxu1 %v2731_v19  ;;  %v2735_v19 = vor.u32 %v2879_v13, %v2734_v12 }
 0x76d   : > { %v1655_v31 = vadd.f32 %v1654_v28, %v1378_v22  ;;  %v1668_v32 = vadd.f32 %v1667_v29, %v1379_v23  ;;  %v1381_v22 = vperm.slane %v4014_v3, 1 }
 0x76f   : > { %v1781_v40 = vmax.f32 %v1655_v31, 0.0  ;;  %v1782_v42 = vmax.f32 %v1668_v32, 0.0 }
 0x771   : > { %v1797_v45 = vpack.c.bf16 %v1781_v40, %v1781_v40  ;;  %v1798_v46 = vpack.c.bf16 %v1782_v42, %v1782_v42  ;;  %v1628_v47 = vpop.f32.mrf.mxu2  ;;  %v1641_v48 = vpop.f32.mrf.mxu3  ;;  %2081 = vmatpush.bf16.xpose.msra.mxu2 %v2719_v33  ;;  %2094 = vmatpush.bf16.xpose.msra.mxu3 %v2723_v34  ;;  %v1387_v40 = vperm.slane %v4014_v3, 7 }
 0x772   : > { %v1629_v50 = vadd.f32 %v1628_v47, %v1376_v38  ;;  %v1642_v51 = vadd.f32 %v1641_v48, %v1377_v39  ;;  %v1386_v39 = vperm.slane %v4014_v3, 6  ;;  %v1385_v47 = vperm.slane %v4014_v3, 5 }
 0x773   : > { %2056 = vmatmul.bf16.vlgmr.msra.gmra.mxu0 %v1797_v45  ;;  %2069 = vmatmul.bf16.vlgmr.msra.gmra.mxu1 %v1798_v46  ;;  %v1384_v46 = vperm.slane %v4014_v3, 4 }
 0x774   : > { %v1779_v54 = vmax.f32 %v1629_v50, 0.0  ;;  %v1780_v55 = vmax.f32 %v1642_v51, 0.0  ;;  %v1656_v56 = vpop.f32.mrf.mxu0  ;;  %v1669_v57 = vpop.f32.mrf.mxu1  ;;  %2158 = vmatpush.bf16.xpose.msra.mxu0 %v2807_v43  ;;  %2171 = vmatpush.bf16.xpose.msra.mxu1 %v2811_v44 }
 0x776   : > { %v1795_v9 = vpack.c.bf16 %v1779_v54, %v1779_v54  ;;  %v1796_v1 = vpack.c.bf16 %v1780_v55, %v1780_v55 }
 0x778   : > { %2030 = vmatmul.bf16.vlgmr.msrb.gmra.mxu2 %v1795_v9  ;;  %2043 = vmatmul.bf16.vlgmr.msrb.gmra.mxu3 %v1796_v1 }
 0x779   : > { %v1630_v6 = vpop.f32.mrf.mxu2  ;;  %v1643_v7 = vpop.f32.mrf.mxu3  ;;  %2132 = vmatpush.bf16.xpose.msrb.mxu2 %v2799_v59  ;;  %2145 = vmatpush.bf16.xpose.msrb.mxu3 %v2803_v60 }
 0x77a   : > { %v3006_v6 = vld [vmem:[%s4152_s1] ss:$0 sm:$0xff] }
 0x77c   : > { %v1706_v16 = vpop.f32.mrf.mxu0  ;;  %v1719_v2 = vpop.f32.mrf.mxu1  ;;  %2159 = vmatpush.bf16.xpose.msra.mxu0 %v2743_v4  ;;  %2172 = vmatpush.bf16.xpose.msra.mxu1 %v2747_v5 }
 0x77d   : > { %v1707_v17 = vadd.f32 %v1706_v16, %v1382_v8  ;;  %v1720_v18 = vadd.f32 %v1719_v2, %v1383_v10 }
 0x77f   : > { %v1785_v23 = vmax.f32 %v1707_v17, 0.0  ;;  %v1786_v24 = vmax.f32 %v1720_v18, 0.0 }
 0x781   : > { %v1801_v25 = vpack.c.bf16 %v1785_v23, %v1785_v23  ;;  %v1802_v26 = vpack.c.bf16 %v1786_v24, %v1786_v24  ;;  %v1680_v27 = vpop.f32.mrf.mxu2  ;;  %v1693_v28 = vpop.f32.mrf.mxu3  ;;  %2133 = vmatpush.bf16.xpose.msrb.mxu2 %v2735_v19  ;;  %2146 = vmatpush.bf16.xpose.msrb.mxu3 %v2739_v20 }
 0x782   : > { %v1681_v29 = vadd.f32 %v1680_v27, %v1380_v21  ;;  %v1694_v30 = vadd.f32 %v1693_v28, %v1381_v22 }
 0x783   : > { %2108 = vmatmul.bf16.vlgmr.msrb.gmra.mxu0 %v1801_v25  ;;  %2121 = vmatmul.bf16.vlgmr.msrb.gmra.mxu1 %v1802_v26 }
 0x784   : > { %v1783_v31 = vmax.f32 %v1681_v29, 0.0  ;;  %v1784_v32 = vmax.f32 %v1694_v30, 0.0  ;;  %v1708_v33 = vpop.f32.mrf.mxu0  ;;  %v1721_v34 = vpop.f32.mrf.mxu1 }
 0x786   : > { %v1799_v35 = vpack.c.bf16 %v1783_v31, %v1783_v31  ;;  %v1800_v36 = vpack.c.bf16 %v1784_v32, %v1784_v32 }
 0x788   : > { %2082 = vmatmul.bf16.vlgmr.msra.gmra.mxu2 %v1799_v35  ;;  %2095 = vmatmul.bf16.vlgmr.msra.gmra.mxu3 %v1800_v36 }
 0x789   : > { %v1682_v37 = vpop.f32.mrf.mxu2  ;;  %v1695_v38 = vpop.f32.mrf.mxu3 }
 0x78c   : > { %v1758_v42 = vpop.f32.mrf.mxu0  ;;  %v1771_v43 = vpop.f32.mrf.mxu1 }
 0x78d   : > { %v1759_v44 = vadd.f32 %v1758_v42, %v1386_v39  ;;  %v1772_v45 = vadd.f32 %v1771_v43, %v1387_v40 }
 0x78f   : > { %v1789_v48 = vmax.f32 %v1759_v44, 0.0  ;;  %v1790_v49 = vmax.f32 %v1772_v45, 0.0 }
 0x791   : > { %v1805_v50 = vpack.c.bf16 %v1789_v48, %v1789_v48  ;;  %v1806_v51 = vpack.c.bf16 %v1790_v49, %v1790_v49  ;;  %v1732_v52 = vpop.f32.mrf.mxu2  ;;  %v1745_v41 = vpop.f32.mrf.mxu3 }
 0x792   : > { %v1733_v53 = vadd.f32 %v1732_v52, %v1384_v46  ;;  %v1746_v54 = vadd.f32 %v1745_v41, %v1385_v47 }
 0x793   : > { %2160 = vmatmul.bf16.vlgmr.msra.gmra.mxu0 %v1805_v50  ;;  %2173 = vmatmul.bf16.vlgmr.msra.gmra.mxu1 %v1806_v51 }
 0x794   : > { %v1787_v55 = vmax.f32 %v1733_v53, 0.0  ;;  %v1788_v56 = vmax.f32 %v1746_v54, 0.0  ;;  %v1760_v57 = vpop.f32.mrf.mxu0  ;;  %v1773_v58 = vpop.f32.mrf.mxu1 }
 0x796   : > { %v1803_v59 = vpack.c.bf16 %v1787_v55, %v1787_v55  ;;  %v1804_v60 = vpack.c.bf16 %v1788_v56, %v1788_v56 }
 0x798   : > { %2134 = vmatmul.bf16.vlgmr.msrb.gmra.mxu2 %v1803_v59  ;;  %2147 = vmatmul.bf16.vlgmr.msrb.gmra.mxu3 %v1804_v60 }
 0x799   : > { %v1734_v61 = vpop.f32.mrf.mxu2  ;;  %v1747_v62 = vpop.f32.mrf.mxu3 }
 0x7e0   : > { %v2005_v63 = vpop.f32.mrf.mxu0  ;;  %v2018_v9 = vpop.f32.mrf.mxu1 }
 0x7e8   : > { %v2007_v1 = vpop.f32.mrf.mxu0  ;;  %v2020_v3 = vpop.f32.mrf.mxu1 }
 0x7e9   : > { %v3007_v1 = vld [vmem:[%s877_s24] ss:$0 sm:$0xff] }
 0x7eb   : > { %v1979_v4 = vpop.f32.mrf.mxu2  ;;  %v1992_v5 = vpop.f32.mrf.mxu3 }
 0x7ec   : > { %v1980_v10 = vadd.f32 %v3006_v6, %v1979_v4 }
 0x7ee   : > { %v1993_v14 = vadd.f32 %v1992_v5, %v1980_v10 }
 0x7f0   : > { %v2057_v7 = vpop.f32.mrf.mxu0  ;;  %v2070_v8 = vpop.f32.mrf.mxu1  ;;  %v2006_v2 = vadd.f32 %v2005_v63, %v1993_v14 }
 0x7f2   : > { %v2019_v19 = vadd.f32 %v2018_v9, %v2006_v2 }
 0x7f3   : > { %v1981_v12 = vpop.f32.mrf.mxu2  ;;  %v1994_v13 = vpop.f32.mrf.mxu3 }
 0x7f8   : > { %v2059_v15 = vpop.f32.mrf.mxu0  ;;  %v2072_v16 = vpop.f32.mrf.mxu1 }
 0x7fb   : > { %v2031_v17 = vpop.f32.mrf.mxu2  ;;  %v2044_v18 = vpop.f32.mrf.mxu3 }
 0x7fc   : > { %v2032_v20 = vadd.f32 %v2031_v17, %v2019_v19 }
 0x7fe   : > { %v2045_v25 = vadd.f32 %v2044_v18, %v2032_v20 }
 0x800   : > { %v2109_v21 = vpop.f32.mrf.mxu0  ;;  %v2122_v22 = vpop.f32.mrf.mxu1  ;;  %v2058_v26 = vadd.f32 %v2057_v7, %v2045_v25 }
 0x802   : > { %v2071_v31 = vadd.f32 %v2070_v8, %v2058_v26 }
 0x803   : > { %v2033_v23 = vpop.f32.mrf.mxu2  ;;  %v2046_v24 = vpop.f32.mrf.mxu3 }
 0x808   : > { %v2111_v27 = vpop.f32.mrf.mxu0  ;;  %v2124_v28 = vpop.f32.mrf.mxu1 }
 0x80b   : > { %v2083_v29 = vpop.f32.mrf.mxu2  ;;  %v2096_v30 = vpop.f32.mrf.mxu3 }
 0x80c   : > { %v2084_v32 = vadd.f32 %v2083_v29, %v2071_v31 }
 0x80e   : > { %v2097_v35 = vadd.f32 %v2096_v30, %v2084_v32 }
 0x810   : > { %v2161_v33 = vpop.f32.mrf.mxu0  ;;  %v2174_v34 = vpop.f32.mrf.mxu1  ;;  %v2110_v38 = vadd.f32 %v2109_v21, %v2097_v35 }
 0x812   : > { %v2123_v42 = vadd.f32 %v2122_v22, %v2110_v38 }
 0x813   : > { %v2085_v36 = vpop.f32.mrf.mxu2  ;;  %v2098_v37 = vpop.f32.mrf.mxu3 }
 0x818   : > { %v2163_v39 = vpop.f32.mrf.mxu0  ;;  %v2176_v40 = vpop.f32.mrf.mxu1 }
 0x81b   : > { %v2135_v43 = vpop.f32.mrf.mxu2  ;;  %v2148_v44 = vpop.f32.mrf.mxu3 }
 0x81c   : > { %v2136_v45 = vadd.f32 %v2135_v43, %v2123_v42 }
 0x81e   : > { %v2149_v46 = vadd.f32 %v2148_v44, %v2136_v45 }
 0x820   : > { %v2162_v47 = vadd.f32 %v2161_v33, %v2149_v46 }
 0x822   : > { %v2175_v48 = vadd.f32 %v2174_v34, %v2162_v47 }
 0x823   : > { %v2137_v49 = vpop.f32.mrf.mxu2  ;;  %v2150_v50 = vpop.f32.mrf.mxu3 }
 0x824   : > { %v2178_v51 = vadd.f32 %v2175_v48, %v3875_v11 }
 0x826   : > { %v2179_v52 = vsel %vm1017_vm2, %v2178_v51, 0.0 }
 0x827   : > { %2180 = vadd.xlane.f32.xlu1 %v2179_v52 }
 0x89a   : > { %v2181_v41 = vpop.xlane.xlu1 %2180 }
 0x89b   : > { %v2182_v53 = vmul.f32 %v2181_v41, %v3818_v0 }
 0x89d   : > { %v2183_v54 = vsub.f32 %v2178_v51, %v2182_v53 }
 0x89f   : > { %v2184_v55 = vmul.f32 %v2183_v54, %v2183_v54 }
 0x8a1   : > { %v2185_v56 = vsel %vm1017_vm2, %v2184_v55, 0.0 }
 0x8a2   : > { %2186 = vadd.xlane.f32.xlu1 %v2185_v56 }
 0x915   : > { %v2187_v57 = vpop.xlane.xlu1 %2186 }
 0x916   : > { %v2188_v58 = vmul.f32 %v2187_v57, %v3818_v0  ;;  %v3008_v0 = vld [vmem:[%s880_s13] ss:$0 sm:$0xff] }
 0x918   : > { %v2189_v59 = vadd.f32 1e-05, %v2188_v58 }
 0x91a   : > { %3029 = vrsqrt.f32 %v2189_v59  ;;  %vm2196_vm12 = vweird.f32 %v2189_v59 }
 0x920   : > { %v3030_v60 = vpop.eup %3029 }
 0x921   : > { %v2191_v11 = vmul.f32 %v3030_v60, %v2189_v59  ;;  %vm2197_vm11 = vweird.f32 %v3030_v60 }
 0x922   : > { %vm2198_vm13 = vmor %vm2196_vm12, %vm2197_vm11 }
 0x923   : > { %v2192_v61 = vmul.f32 %v3030_v60, %v2191_v11 }
 0x925   : > { %v2193_v62 = vmul.f32 0.5, %v2192_v61 }
 0x927   : > { %v2194_v63 = vsub.f32 1.5, %v2193_v62 }
 0x929   : > { %v2195_v9 = vmul.f32 %v3030_v60, %v2194_v63 }
 0x92b   : > { %v2199_v3 = vsel %vm2198_vm13, %v3030_v60, %v2195_v9 }
 0x92c   : > { %v2200_v4 = vmul.f32 %v2199_v3, %v2183_v54 }
 0x92e   : > { %v2204_v5 = vmul.f32 %v3007_v1, %v2200_v4  ;;  %2213 = sbr.rel (%p2812_p5) target bundleno = 2498 (0x9c2), region = 132 }
 0x930   : > { %v2208_v6 = vadd.f32 %v3008_v0, %v2204_v5 }
 0x932   : > { %2209 = vst.msk [vmem:[#allocation2] sm:$0xff] %vm1017_vm2, %v2208_v6 }
 0x933   : > { %v2898_v7 = vld [vmem:[%s4156_s21 + $0x8] sm:$0xff]  ;;  %v2897_v8 = vld [vmem:[%s4156_s21] sm:$0xff]  ;;  %vm2253_vm14 = vcmask 31744  }
 0x934   : > { %2246 = vmatpush.bf16.msra.mxu0 %v2898_v7  ;;  %v3031_v13 = vld [vmem:[#allocation16] ss:$0 sm:$0xff] }
 0x938   : > { %2247 = vmatpush.bf16.msra.mxu0 %v2897_v8 }
 0x939   : > { %v2214_v10 = vld [vmem:[#allocation2] sm:$0xff] }
 0x93a   : > { %v2220_v12 = vpack.c.bf16 %v2214_v10, %v2214_v10 }
 0x93c   : > { %2821 = vmatmul.msk.bf16.vlgmr.msra.gmra.mxu0 %vm1017_vm2, %v2220_v12 }
 0x9b9   : > { %v2249_v14 = vpop.f32.mrf.mxu0 }
 0x9ba   : > { %v2250_v15 = vadd.f32 %v3031_v13, %v2249_v14 }
 0x9bc   : > { %2254 = vst.msk [vmem:[%s4157_s22] sm:$0xff] %vm2253_vm14, %v2250_v15 }
 0x9c1   : > { %v2251_v16 = vpop.f32.mrf.mxu0 }
 0x9c2 PF: > { %s4158_s27 = sld [smem:[#allocation26_spill]] }
 0x9c3   : > { %s4159_s24 = sld [smem:[#allocation23_spill]] }
 0x9c4   : > { %s4160_s25 = sld [smem:[#allocation24_spill]] }
 0x9c5   : > { %s4161_s26 = sld [smem:[#allocation27_spill]] }
 0x9c8   : > { %p37_p8 = scmp.ge.s32.totalorder %s4158_s27, 4  }
 0x9ca   :  { %39 = sbr.rel (!%p37_p8) target bundleno = 24 (0x18), region = 228 }
 0x9cf   :  { %2266 = vsyncpa [#allocation4], 1 }
 0x9d0   :  { %2268 = vsyncpa [#allocation4 + $0x1], 1 }
 0x9d1   :  { %2269 = vsyncpa [#allocation6], 1 }
 0x9d2   :  { %2271 = vsyncpa [#allocation6 + $0x1], 1 }
 0x9d3   :  { %2272 = vsyncpa [#allocation9], 1 }
 0x9d4   :  { %2274 = vsyncpa [#allocation9 + $0x1], 1 }
 0x9d5   :  { %2275 = vsyncpa [#allocation12], 1 }
 0x9d6   :  { %2277 = vsyncpa [#allocation12 + $0x1], 1 }
 0x9d7   :  { %2278 = vsyncpa [#allocation15], 1 }
 0x9d8   :  { %2280 = vsyncpa [#allocation15 + $0x1], 1 }

</bundles_post_ra>
